<compile_context>
chip_gen: v7x
topology: tpu7x:2x2x1
jax: 0.10.0
libtpu: 0.0.40
codegen_flags: <defaults>
</compile_context>

<pallas_src>
import jax
import jax.numpy as jnp
from jax.experimental import pallas as pl
from jax.experimental.pallas import tpu as pltpu

# ----- small synthetic config -----
B = 2         # batch
D = 3         # point-coordinate dims (knn space)
N = 16        # number of points
K = 4         # neighbours
C_IN = 4      # input feature channels
F0 = 8        # out_feats[0]
F1 = 16       # out_feats[1]  (!= C_IN -> shortcut conv path is active)
BN_EPS = 1e-5  # torch BatchNorm default eps

# padded / packed layout constants
DP = 8                      # D padded to one sublane tile of contraction
CP = 8                      # C_IN padded likewise
NF = N * F1                 # lane-dense output row width (multiple of 128)
PARAM_ROWS = 24             # packed parameter tensor rows (multiple of 8)
ROW_W1 = CP                 # rows [CP, CP+F0): folded conv1 weight
ROW_B0, ROW_B1, ROW_BSC = 16, 17, 18
IDX_MASK = N - 1            # N is a power of two; low bits carry the tie-break index
INT_MIN = -2147483648


def edge_conv_kernel(x_ref, params_ref, o_ref, sel_ref, p_ref):
    # ---- packed parameters: one lane-dense DMA, static in-kernel slices -------------------
    wfb = params_ref[0:CP, 0:2 * F0 + F1]            # (8, 32)  [centre | neighbour | shortcut]
    w1 = params_ref[ROW_W1:ROW_W1 + F0, 0:F1]        # (8, 16)  folded conv1
    b0 = params_ref[ROW_B0:ROW_B0 + 1, 0:F0]         # (1, 8)   folded BN shift, layer 0
    b1 = params_ref[ROW_B1:ROW_B1 + 1, 0:F1]         # (1, 16)  folded BN shift, layer 1
    bsc = params_ref[ROW_BSC:ROW_BSC + 1, 0:F1]      # (1, 16)  folded BN shift, shortcut

    pts = x_ref[0, :, 0:DP]                          # (N, 8)  zero-padded coordinates
    fb = x_ref[0, :, DP:DP + CP]                     # (N, 8)  zero-padded features

    # ---- kNN scores on the MXU -------------------------------------------------------------
    row_nn = jax.lax.broadcasted_iota(jnp.int32, (N, N), 0)
    col_nn = jax.lax.broadcasted_iota(jnp.int32, (N, N), 1)
    eye_nn = row_nn == col_nn

    inner = jnp.einsum("id,jd->ij", pts, pts, preferred_element_type=jnp.float32)   # p_i . p_j
    sq_j = jnp.sum(jnp.where(eye_nn, inner, 0.0), axis=0, keepdims=True)            # ||p_j||^2 (1, N)
    # torch score is -||p_i||^2 + 2 p_i.p_j - ||p_j||^2 ; the per-row constant term cannot
    # change the per-row top-k ordering and is dropped.
    score = 2.0 * inner - sq_j                                                      # (N, N)

    # ---- pack (score, tie-break index) into a single int32 key ------------------------------
    bits = pltpu.bitcast(score, jnp.int32)
    key = jnp.where(bits < 0, jnp.int32(INT_MIN) - bits, bits)          # monotone float->int map
    packed = (key & jnp.int32(~IDX_MASK)) | (jnp.int32(N - 1) - col_nn)  # smallest col wins ties
    packed = jnp.where(eye_nn, jnp.int32(INT_MIN), packed)               # never select self

    # ---- fused projections: centre / neighbour / shortcut in ONE matmul ---------------------
    proj = jnp.dot(fb, wfb, preferred_element_type=jnp.float32)          # (N, 32)
    p_ref[0:N, :] = proj[:, F0:2 * F0]                                   # neighbour projection
    p_ref[N:2 * N, :] = proj[:, 0:F0]                                    # centre projection
    sc = proj[:, 2 * F0:2 * F0 + F1] + bsc                               # (N, F1) shortcut (BN folded)

    # right half of the augmented selector: K-tiled identity (adds the centre term in the gather)
    row_kn = jax.lax.broadcasted_iota(jnp.int32, (K * N, N), 0)
    col_kn = jax.lax.broadcasted_iota(jnp.int32, (K * N, N), 1)
    sel_ref[:, N:2 * N] = jnp.where((row_kn & (N - 1)) == col_kn, 1.0, 0.0).astype(jnp.float32)

    # ---- top-K: ONE packed lane-reduce per neighbour, one-hots written straight to scratch --
    def knn_step(t, pk):
        m = jnp.max(pk, axis=-1, keepdims=True)                          # (N, 1) single XLU reduce
        nbr = jnp.int32(N - 1) - (m & jnp.int32(IDX_MASK))               # decoded argmax column
        onehot = (col_nn == nbr).astype(jnp.float32)                     # (N, N)
        sel_ref[pl.ds(pl.multiple_of(t * N, N), N), 0:N] = onehot
        return jnp.where(onehot > 0.0, jnp.int32(INT_MIN), pk)           # mask the selected column

    _ = jax.lax.fori_loop(0, K, knn_step, packed, unroll=True)

    # ---- EdgeConv layer 0: gather + centre-add in one MXU op, then bias + ReLU --------------
    edge = jnp.dot(sel_ref[...], p_ref[...], preferred_element_type=jnp.float32)   # (K*N, F0)
    h = jnp.maximum(edge + b0, 0.0)

    # ---- EdgeConv layer 1 --------------------------------------------------------------------
    h = jnp.maximum(jnp.dot(h, w1, preferred_element_type=jnp.float32) + b1, 0.0)  # (K*N, F1)

    # ---- mean over the K neighbour blocks folded into a tiny matmul ---------------------------
    row_m = jax.lax.broadcasted_iota(jnp.int32, (N, K * N), 0)
    col_m = jax.lax.broadcasted_iota(jnp.int32, (N, K * N), 1)
    mean_mat = jnp.where((col_m & (N - 1)) == row_m, 1.0 / K, 0.0)
    fts = jnp.dot(mean_mat, h, preferred_element_type=jnp.float32)                 # (N, F1)

    out = jnp.maximum(sc + fts, 0.0)                                               # (N, F1)

    # ---- lane-dense flatten (N, F1) -> (1, N*F1): replicate-matmul + masked sublane reduce ---
    row_r = jax.lax.broadcasted_iota(jnp.int32, (F1, NF), 0)
    col_r = jax.lax.broadcasted_iota(jnp.int32, (F1, NF), 1)
    rep = jnp.where((col_r & (F1 - 1)) == row_r, 1.0, 0.0)                         # (F1, NF)
    out_rep = jnp.dot(out, rep, preferred_element_type=jnp.float32)                # out_rep[n,c]=out[n,c%F1]
    row_s = jax.lax.broadcasted_iota(jnp.int32, (N, NF), 0)
    col_s = jax.lax.broadcasted_iota(jnp.int32, (N, NF), 1)
    pick = (col_s & jnp.int32(~(F1 - 1))) == row_s * F1                            # c // F1 == n
    flat = jnp.sum(jnp.where(pick, out_rep, 0.0), axis=0, keepdims=True)           # (1, NF)
    o_ref[0] = flat.astype(o_ref.dtype)                                            # unmasked 256-lane store


def _fold_params(raw):
    """Fold eval-mode BatchNorm into the 1x1-conv weights and pack everything into one tensor."""
    def scale_shift(g, beta, mean, var):
        s = g / jnp.sqrt(var + BN_EPS)
        return s, beta - mean * s

    s0, t0 = scale_shift(raw["g0"], raw["b0"], raw["m0"], raw["v0"])
    s1, t1 = scale_shift(raw["g1"], raw["b1"], raw["m1"], raw["v1"])
    ss, ts = scale_shift(raw["gsc"], raw["bsc"], raw["msc"], raw["vsc"])

    w0t = raw["w0"].T                                   # (2C, F0): rows 0:C -> x_c, C:2C -> (x_j - x_c)
    w0_center = (w0t[:C_IN] - w0t[C_IN:]) * s0[None, :]  # multiplies the centre features
    w0_nbr = w0t[C_IN:] * s0[None, :]                     # multiplies the neighbour features
    w1_f = raw["w1"].T * s1[None, :]                      # (F0, F1)
    wsc_f = raw["wsc"].T * ss[None, :]                    # (C, F1)

    wfb = jnp.concatenate([w0_center, w0_nbr, wsc_f], axis=1)   # (C, 2F0+F1) fused fb projection

    params = jnp.zeros((PARAM_ROWS, 128), jnp.float32)
    params = params.at[0:C_IN, 0:2 * F0 + F1].set(wfb)          # padded rows C..CP-1 stay zero
    params = params.at[ROW_W1:ROW_W1 + F0, 0:F1].set(w1_f)
    params = params.at[ROW_B0, 0:F0].set(t0)
    params = params.at[ROW_B1, 0:F1].set(t1)
    params = params.at[ROW_BSC, 0:F1].set(ts)
    return params


def edge_conv_block(points, features, raw):
    """points: (B, D, N); features: (B, C, N) (torch layout). Returns (B, F1, N)."""
    assert K + 1 <= N and N & (N - 1) == 0 and F1 & (F1 - 1) == 0 and (N * F1) % 128 == 0
    params = _fold_params(raw)

    pts_nd = jnp.transpose(points, (0, 2, 1)).astype(jnp.float32)     # (B, N, D)
    f_nd = jnp.transpose(features, (0, 2, 1)).astype(jnp.float32)     # (B, N, C)
    # pad the tiny contraction dims to a full sublane tile and merge into one input DMA
    x = jnp.concatenate(
        [jnp.pad(pts_nd, ((0, 0), (0, 0), (0, DP - D))),
         jnp.pad(f_nd, ((0, 0), (0, 0), (0, CP - C_IN)))], axis=-1)   # (B, N, 16)

    out_flat = pl.pallas_call(
        edge_conv_kernel,
        out_shape=jax.ShapeDtypeStruct((B, 1, NF), jnp.float32),
        grid_spec=pltpu.PrefetchScalarGridSpec(
            num_scalar_prefetch=0,
            grid=(B,),                                               # one batch element per step
            in_specs=[
                pl.BlockSpec((1, N, DP + CP), lambda b: (b, 0, 0)),  # [points | features] merged
                pl.BlockSpec((PARAM_ROWS, 128), lambda b: (0, 0)),   # packed folded params (1 DMA)
            ],
            out_specs=pl.BlockSpec((1, 1, NF), lambda b: (b, 0, 0)),  # lane-dense 256-wide rows
            scratch_shapes=[
                pltpu.VMEM((K * N, 2 * N), jnp.float32),             # [one-hots | tiled identity]
                pltpu.VMEM((2 * N, F0), jnp.float32),                # [nbr proj ; centre proj]
            ],
        ),
        compiler_params=pltpu.CompilerParams(
            dimension_semantics=("parallel",)),                      # pipelines / splits across TCs
    )(x, params)

    out = out_flat.reshape(B, N, F1)
    return jnp.transpose(out, (0, 2, 1))                             # (B, F1, N), torch layout


def edge_conv_block_ref(points, features, raw):
    """Pure-JAX mirror of the PyTorch EdgeConvBlock.forward (eval mode)."""
    inner = jnp.einsum("bdi,bdj->bij", points, points)
    sq = jnp.sum(points * points, axis=1)                              # (B, N)
    pdist = 2.0 * inner - sq[:, :, None] - sq[:, None, :]              # -||p_i - p_j||^2
    idx = jax.lax.top_k(pdist, K + 1)[1][:, :, 1:]                     # (B, N, K)

    f_t = jnp.transpose(features, (0, 2, 1))                           # (B, N, C)
    nbr = jax.vmap(lambda f, i: f[i])(f_t, idx)                        # (B, N, K, C)
    ctr = jnp.broadcast_to(f_t[:, :, None, :], nbr.shape)
    edge = jnp.concatenate([ctr, nbr - ctr], axis=-1)                  # (B, N, K, 2C)

    def bn(x, g, beta, mean, var):
        return (x - mean) / jnp.sqrt(var + BN_EPS) * g + beta

    h = jnp.einsum("bnkc,fc->bnkf", edge, raw["w0"])                   # conv0 (bias=False)
    h = jax.nn.relu(bn(h, raw["g0"], raw["b0"], raw["m0"], raw["v0"]))
    h = jnp.einsum("bnkf,gf->bnkg", h, raw["w1"])                      # conv1
    h = jax.nn.relu(bn(h, raw["g1"], raw["b1"], raw["m1"], raw["v1"]))
    fts = jnp.mean(h, axis=2)                                          # (B, N, F1)

    sc = jnp.einsum("bcn,fc->bnf", features, raw["wsc"])               # shortcut conv1d
    sc = bn(sc, raw["gsc"], raw["bsc"], raw["msc"], raw["vsc"])
    out = jax.nn.relu(sc + fts)                                        # (B, N, F1)
    return jnp.transpose(out, (0, 2, 1))                               # (B, F1, N)


if __name__ == "__main__":
    key = jax.random.PRNGKey(0)
    ks = jax.random.split(key, 20)

    def nrm(k, shape, s=0.3):
        return (s * jax.random.normal(k, shape)).astype(jnp.float32)

    def uni(k, shape):
        return jax.random.uniform(k, shape, minval=0.5, maxval=1.5, dtype=jnp.float32)

    raw = {
        "w0": nrm(ks[0], (F0, 2 * C_IN)),     # Conv2d(2C -> F0, 1x1, bias=False)
        "w1": nrm(ks[1], (F1, F0)),           # Conv2d(F0 -> F1, 1x1, bias=False)
        "wsc": nrm(ks[2], (F1, C_IN)),        # shortcut Conv1d(C -> F1, 1, bias=False)
        "g0": uni(ks[3], (F0,)), "b0": nrm(ks[4], (F0,), 0.1),
        "m0": nrm(ks[5], (F0,), 0.1), "v0": uni(ks[6], (F0,)),
        "g1": uni(ks[7], (F1,)), "b1": nrm(ks[8], (F1,), 0.1),
        "m1": nrm(ks[9], (F1,), 0.1), "v1": uni(ks[10], (F1,)),
        "gsc": uni(ks[11], (F1,)), "bsc": nrm(ks[12], (F1,), 0.1),
        "msc": nrm(ks[13], (F1,), 0.1), "vsc": uni(ks[14], (F1,)),
    }
    points = jax.random.normal(ks[15], (B, D, N), dtype=jnp.float32)
    features = jax.random.normal(ks[16], (B, C_IN, N), dtype=jnp.float32)

    out = jax.block_until_ready(edge_conv_block(points, features, raw))
    ref = jax.block_until_ready(edge_conv_block_ref(points, features, raw))

    assert out.shape == (B, F1, N)
    max_diff = float(jnp.max(jnp.abs(out - ref)))
    assert jnp.allclose(out, ref, atol=5e-4, rtol=5e-4), f"max abs diff {max_diff}"
    print("KERNEL_OK")
</pallas_src>

<mosaic_0001>
module attributes {stable_mosaic.version = 11 : i64} {
  func.func @edge_conv_kernel(%arg0: i32, %arg1: memref<1x16x16xf32, #tpu.memory_space<vmem>>, %arg2: memref<24x128xf32, #tpu.memory_space<vmem>>, %arg3: memref<1x1x256xf32, #tpu.memory_space<vmem>>, %arg4: memref<64x32xf32, #tpu.memory_space<vmem>>, %arg5: memref<32x8xf32, #tpu.memory_space<vmem>>) attributes {dimension_semantics = [#tpu.dimension_semantics<parallel>], iteration_bounds = array<i64: 2>, scalar_prefetch = 0 : i64, scratch_operands = 2 : i64, tpu.core_type = #tpu.core_type<tc>, window_params = [{transform_indices = @transform_0, window_bounds = array<i64: 1, 16, 16>}, {pipeline_mode = #tpu.pipeline_mode<synchronous>, transform_indices = @transform_1, window_bounds = array<i64: 24, 128>}, {transform_indices = @transform_2, window_bounds = array<i64: 1, 1, 256>}]} {
    %c0 = arith.constant 0 : index
    %c0_0 = arith.constant 0 : index
    %0 = vector.load %arg2[%c0, %c0_0] : memref<24x128xf32, #tpu.memory_space<vmem>>, vector<8x32xf32>
    %c8 = arith.constant 8 : index
    %c0_1 = arith.constant 0 : index
    %1 = vector.load %arg2[%c8, %c0_1] : memref<24x128xf32, #tpu.memory_space<vmem>>, vector<8x16xf32>
    %c16 = arith.constant 16 : index
    %c0_2 = arith.constant 0 : index
    %2 = vector.load %arg2[%c16, %c0_2] : memref<24x128xf32, #tpu.memory_space<vmem>>, vector<1x8xf32>
    %c17 = arith.constant 17 : index
    %c0_3 = arith.constant 0 : index
    %3 = vector.load %arg2[%c17, %c0_3] : memref<24x128xf32, #tpu.memory_space<vmem>>, vector<1x16xf32>
    %c18 = arith.constant 18 : index
    %c0_4 = arith.constant 0 : index
    %4 = vector.load %arg2[%c18, %c0_4] : memref<24x128xf32, #tpu.memory_space<vmem>>, vector<1x16xf32>
    %c0_5 = arith.constant 0 : index
    %c0_6 = arith.constant 0 : index
    %c0_7 = arith.constant 0 : index
    %5 = vector.load %arg1[%c0_5, %c0_6, %c0_7] : memref<1x16x16xf32, #tpu.memory_space<vmem>>, vector<1x16x8xf32>
    %6 = vector.shape_cast %5 : vector<1x16x8xf32> to vector<16x8xf32>
    %c0_8 = arith.constant 0 : index
    %c0_9 = arith.constant 0 : index
    %c8_10 = arith.constant 8 : index
    %7 = vector.load %arg1[%c0_8, %c0_9, %c8_10] : memref<1x16x16xf32, #tpu.memory_space<vmem>>, vector<1x16x8xf32>
    %8 = vector.shape_cast %7 : vector<1x16x8xf32> to vector<16x8xf32>
    %9 = tpu.iota {dimensions = array<i32: 0>} : vector<16x16xi32>
    %10 = tpu.iota {dimensions = array<i32: 1>} : vector<16x16xi32>
    %11 = arith.cmpi eq, %9, %10 : vector<16x16xi32>
    "tpu.trace_start"() <{level = 10 : i32, message = "id,jd->ij"}> : () -> ()
    %cst = arith.constant dense<0.000000e+00> : vector<16x16xf32>
    %12 = tpu.matmul %6, %6, %cst {dimension_numbers = #tpu.dot_dimension_numbers<[1], [1], [0], [0], [0, 0, 1, 0], [], []>} : vector<16x8xf32>, vector<16x8xf32>, vector<16x16xf32> -> vector<16x16xf32>
    %cst_11 = arith.constant 0.000000e+00 : f32
    "tpu.trace_stop"() : () -> ()
    %13 = vector.broadcast %cst_11 : f32 to vector<16x16xf32>
    %14 = arith.select %11, %12, %13 : vector<16x16xi1>, vector<16x16xf32>
    %cst_12 = arith.constant dense<0.000000e+00> : vector<16xf32>
    %15 = vector.multi_reduction <add>, %14, %cst_12 [0] : vector<16x16xf32> to vector<16xf32>
    %16 = vector.shape_cast %15 : vector<16xf32> to vector<1x16xf32>
    %cst_13 = arith.constant 2.000000e+00 : f32
    %17 = vector.broadcast %cst_13 : f32 to vector<16x16xf32>
    %18 = arith.mulf %17, %12 : vector<16x16xf32>
    %19 = vector.broadcast %16 : vector<1x16xf32> to vector<16x16xf32>
    %20 = arith.subf %18, %19 : vector<16x16xf32>
    %21 = tpu.bitcast %20 : vector<16x16xf32> -> vector<16x16xi32>
    %c0_i32 = arith.constant 0 : i32
    %22 = vector.broadcast %c0_i32 : i32 to vector<16x16xi32>
    %23 = arith.cmpi slt, %21, %22 : vector<16x16xi32>
    %c-2147483648_i32 = arith.constant -2147483648 : i32
    %24 = vector.broadcast %c-2147483648_i32 : i32 to vector<16x16xi32>
    %25 = arith.subi %24, %21 : vector<16x16xi32>
    %26 = arith.select %23, %25, %21 : vector<16x16xi1>, vector<16x16xi32>
    %c-16_i32 = arith.constant -16 : i32
    %27 = vector.broadcast %c-16_i32 : i32 to vector<16x16xi32>
    %28 = arith.andi %26, %27 : vector<16x16xi32>
    %c15_i32 = arith.constant 15 : i32
    %29 = vector.broadcast %c15_i32 : i32 to vector<16x16xi32>
    %30 = arith.subi %29, %10 : vector<16x16xi32>
    %31 = arith.ori %28, %30 : vector<16x16xi32>
    %c-2147483648_i32_14 = arith.constant -2147483648 : i32
    %32 = vector.broadcast %c-2147483648_i32_14 : i32 to vector<16x16xi32>
    %33 = arith.select %11, %32, %31 : vector<16x16xi1>, vector<16x16xi32>
    %cst_15 = arith.constant dense<0.000000e+00> : vector<16x32xf32>
    %34 = tpu.matmul %8, %0, %cst_15 {dimension_numbers = #tpu.dot_dimension_numbers<[1], [0], [0], [1], [0, 0, 1, 1], [], []>} : vector<16x8xf32>, vector<8x32xf32>, vector<16x32xf32> -> vector<16x32xf32>
    %35 = vector.extract_strided_slice %34 {offsets = [0, 8], sizes = [16, 8], strides = [1, 1]} : vector<16x32xf32> to vector<16x8xf32>
    %c0_16 = arith.constant 0 : index
    %c0_17 = arith.constant 0 : index
    %36 = vector.load %arg5[%c0_16, %c0_17] : memref<32x8xf32, #tpu.memory_space<vmem>>, vector<16x8xf32>
    tpu.vector_store %arg5[%c0_16, %c0_17], %35 {strides = array<i32>} : memref<32x8xf32, #tpu.memory_space<vmem>>, vector<16x8xf32>,
    %37 = vector.extract_strided_slice %34 {offsets = [0, 0], sizes = [16, 8], strides = [1, 1]} : vector<16x32xf32> to vector<16x8xf32>
    %c16_18 = arith.constant 16 : index
    %c0_19 = arith.constant 0 : index
    %38 = vector.load %arg5[%c16_18, %c0_19] : memref<32x8xf32, #tpu.memory_space<vmem>>, vector<16x8xf32>
    tpu.vector_store %arg5[%c16_18, %c0_19], %37 {strides = array<i32>} : memref<32x8xf32, #tpu.memory_space<vmem>>, vector<16x8xf32>,
    %39 = vector.extract_strided_slice %34 {offsets = [0, 16], sizes = [16, 16], strides = [1, 1]} : vector<16x32xf32> to vector<16x16xf32>
    %40 = vector.broadcast %4 : vector<1x16xf32> to vector<16x16xf32>
    %41 = arith.addf %39, %40 : vector<16x16xf32>
    %42 = tpu.iota {dimensions = array<i32: 0>} : vector<64x16xi32>
    %43 = tpu.iota {dimensions = array<i32: 1>} : vector<64x16xi32>
    %c15_i32_20 = arith.constant 15 : i32
    %44 = vector.broadcast %c15_i32_20 : i32 to vector<64x16xi32>
    %45 = arith.andi %42, %44 : vector<64x16xi32>
    %46 = arith.cmpi eq, %45, %43 : vector<64x16xi32>
    %cst_21 = arith.constant 1.000000e+00 : f32
    %cst_22 = arith.constant 0.000000e+00 : f32
    %47 = vector.broadcast %cst_21 : f32 to vector<64x16xf32>
    %48 = vector.broadcast %cst_22 : f32 to vector<64x16xf32>
    %49 = arith.select %46, %47, %48 : vector<64x16xi1>, vector<64x16xf32>
    %c0_23 = arith.constant 0 : index
    %c16_24 = arith.constant 16 : index
    %50 = vector.load %arg4[%c0_23, %c16_24] : memref<64x32xf32, #tpu.memory_space<vmem>>, vector<64x16xf32>
    tpu.vector_store %arg4[%c0_23, %c16_24], %49 {strides = array<i32>} : memref<64x32xf32, #tpu.memory_space<vmem>>, vector<64x16xf32>,
    %c0_i32_25 = arith.constant 0 : i32
    %cst_26 = arith.constant dense<-2147483648> : vector<16xi32>
    %51 = vector.multi_reduction <maxsi>, %33, %cst_26 [1] : vector<16x16xi32> to vector<16xi32>
    %52 = vector.shape_cast %51 : vector<16xi32> to vector<16x1xi32>
    %c15_i32_27 = arith.constant 15 : i32
    %53 = vector.broadcast %c15_i32_27 : i32 to vector<16x1xi32>
    %54 = arith.andi %52, %53 : vector<16x1xi32>
    %c15_i32_28 = arith.constant 15 : i32
    %55 = vector.broadcast %c15_i32_28 : i32 to vector<16x1xi32>
    %56 = arith.subi %55, %54 : vector<16x1xi32>
    %57 = vector.broadcast %56 : vector<16x1xi32> to vector<16x16xi32>
    %58 = arith.cmpi eq, %10, %57 : vector<16x16xi32>
    %59 = arith.extui %58 : vector<16x16xi1> to vector<16x16xi32>
    %60 = arith.sitofp %59 : vector<16x16xi32> to vector<16x16xf32>
    %c16_i32 = arith.constant 16 : i32
    %61 = arith.muli %c0_i32_25, %c16_i32 : i32
    %62 = tpu.assume_multiple %61, 16 : i32
    %63 = arith.index_cast %62 : i32 to index
    %c0_29 = arith.constant 0 : index
    %64 = vector.load %arg4[%63, %c0_29] : memref<64x32xf32, #tpu.memory_space<vmem>>, vector<16x16xf32>
    tpu.vector_store %arg4[%63, %c0_29], %60 {strides = array<i32>} : memref<64x32xf32, #tpu.memory_space<vmem>>, vector<16x16xf32>,
    %cst_30 = arith.constant 0.000000e+00 : f32
    %65 = vector.broadcast %cst_30 : f32 to vector<16x16xf32>
    %66 = arith.cmpf ogt, %60, %65 : vector<16x16xf32>
    %c-2147483648_i32_31 = arith.constant -2147483648 : i32
    %67 = vector.broadcast %c-2147483648_i32_31 : i32 to vector<16x16xi32>
    %68 = arith.select %66, %67, %33 : vector<16x16xi1>, vector<16x16xi32>
    %c1_i32 = arith.constant 1 : i32
    %cst_32 = arith.constant dense<-2147483648> : vector<16xi32>
    %69 = vector.multi_reduction <maxsi>, %68, %cst_32 [1] : vector<16x16xi32> to vector<16xi32>
    %70 = vector.shape_cast %69 : vector<16xi32> to vector<16x1xi32>
    %c15_i32_33 = arith.constant 15 : i32
    %71 = vector.broadcast %c15_i32_33 : i32 to vector<16x1xi32>
    %72 = arith.andi %70, %71 : vector<16x1xi32>
    %c15_i32_34 = arith.constant 15 : i32
    %73 = vector.broadcast %c15_i32_34 : i32 to vector<16x1xi32>
    %74 = arith.subi %73, %72 : vector<16x1xi32>
    %75 = vector.broadcast %74 : vector<16x1xi32> to vector<16x16xi32>
    %76 = arith.cmpi eq, %10, %75 : vector<16x16xi32>
    %77 = arith.extui %76 : vector<16x16xi1> to vector<16x16xi32>
    %78 = arith.sitofp %77 : vector<16x16xi32> to vector<16x16xf32>
    %c16_i32_35 = arith.constant 16 : i32
    %79 = arith.muli %c1_i32, %c16_i32_35 : i32
    %80 = tpu.assume_multiple %79, 16 : i32
    %81 = arith.index_cast %80 : i32 to index
    %c0_36 = arith.constant 0 : index
    %82 = vector.load %arg4[%81, %c0_36] : memref<64x32xf32, #tpu.memory_space<vmem>>, vector<16x16xf32>
    tpu.vector_store %arg4[%81, %c0_36], %78 {strides = array<i32>} : memref<64x32xf32, #tpu.memory_space<vmem>>, vector<16x16xf32>,
    %cst_37 = arith.constant 0.000000e+00 : f32
    %83 = vector.broadcast %cst_37 : f32 to vector<16x16xf32>
    %84 = arith.cmpf ogt, %78, %83 : vector<16x16xf32>
    %c-2147483648_i32_38 = arith.constant -2147483648 : i32
    %85 = vector.broadcast %c-2147483648_i32_38 : i32 to vector<16x16xi32>
    %86 = arith.select %84, %85, %68 : vector<16x16xi1>, vector<16x16xi32>
    %c2_i32 = arith.constant 2 : i32
    %cst_39 = arith.constant dense<-2147483648> : vector<16xi32>
    %87 = vector.multi_reduction <maxsi>, %86, %cst_39 [1] : vector<16x16xi32> to vector<16xi32>
    %88 = vector.shape_cast %87 : vector<16xi32> to vector<16x1xi32>
    %c15_i32_40 = arith.constant 15 : i32
    %89 = vector.broadcast %c15_i32_40 : i32 to vector<16x1xi32>
    %90 = arith.andi %88, %89 : vector<16x1xi32>
    %c15_i32_41 = arith.constant 15 : i32
    %91 = vector.broadcast %c15_i32_41 : i32 to vector<16x1xi32>
    %92 = arith.subi %91, %90 : vector<16x1xi32>
    %93 = vector.broadcast %92 : vector<16x1xi32> to vector<16x16xi32>
    %94 = arith.cmpi eq, %10, %93 : vector<16x16xi32>
    %95 = arith.extui %94 : vector<16x16xi1> to vector<16x16xi32>
    %96 = arith.sitofp %95 : vector<16x16xi32> to vector<16x16xf32>
    %c16_i32_42 = arith.constant 16 : i32
    %97 = arith.muli %c2_i32, %c16_i32_42 : i32
    %98 = tpu.assume_multiple %97, 16 : i32
    %99 = arith.index_cast %98 : i32 to index
    %c0_43 = arith.constant 0 : index
    %100 = vector.load %arg4[%99, %c0_43] : memref<64x32xf32, #tpu.memory_space<vmem>>, vector<16x16xf32>
    tpu.vector_store %arg4[%99, %c0_43], %96 {strides = array<i32>} : memref<64x32xf32, #tpu.memory_space<vmem>>, vector<16x16xf32>,
    %cst_44 = arith.constant 0.000000e+00 : f32
    %101 = vector.broadcast %cst_44 : f32 to vector<16x16xf32>
    %102 = arith.cmpf ogt, %96, %101 : vector<16x16xf32>
    %c-2147483648_i32_45 = arith.constant -2147483648 : i32
    %103 = vector.broadcast %c-2147483648_i32_45 : i32 to vector<16x16xi32>
    %104 = arith.select %102, %103, %86 : vector<16x16xi1>, vector<16x16xi32>
    %c3_i32 = arith.constant 3 : i32
    %cst_46 = arith.constant dense<-2147483648> : vector<16xi32>
    %105 = vector.multi_reduction <maxsi>, %104, %cst_46 [1] : vector<16x16xi32> to vector<16xi32>
    %106 = vector.shape_cast %105 : vector<16xi32> to vector<16x1xi32>
    %c15_i32_47 = arith.constant 15 : i32
    %107 = vector.broadcast %c15_i32_47 : i32 to vector<16x1xi32>
    %108 = arith.andi %106, %107 : vector<16x1xi32>
    %c15_i32_48 = arith.constant 15 : i32
    %109 = vector.broadcast %c15_i32_48 : i32 to vector<16x1xi32>
    %110 = arith.subi %109, %108 : vector<16x1xi32>
    %111 = vector.broadcast %110 : vector<16x1xi32> to vector<16x16xi32>
    %112 = arith.cmpi eq, %10, %111 : vector<16x16xi32>
    %113 = arith.extui %112 : vector<16x16xi1> to vector<16x16xi32>
    %114 = arith.sitofp %113 : vector<16x16xi32> to vector<16x16xf32>
    %c16_i32_49 = arith.constant 16 : i32
    %115 = arith.muli %c3_i32, %c16_i32_49 : i32
    %116 = tpu.assume_multiple %115, 16 : i32
    %117 = arith.index_cast %116 : i32 to index
    %c0_50 = arith.constant 0 : index
    %118 = vector.load %arg4[%117, %c0_50] : memref<64x32xf32, #tpu.memory_space<vmem>>, vector<16x16xf32>
    tpu.vector_store %arg4[%117, %c0_50], %114 {strides = array<i32>} : memref<64x32xf32, #tpu.memory_space<vmem>>, vector<16x16xf32>,
    %cst_51 = arith.constant 0.000000e+00 : f32
    %119 = vector.broadcast %cst_51 : f32 to vector<16x16xf32>
    %120 = arith.cmpf ogt, %114, %119 : vector<16x16xf32>
    %c-2147483648_i32_52 = arith.constant -2147483648 : i32
    %121 = vector.broadcast %c-2147483648_i32_52 : i32 to vector<16x16xi32>
    %122 = arith.select %120, %121, %104 : vector<16x16xi1>, vector<16x16xi32>
    %c4_i32 = arith.constant 4 : i32
    %c0_53 = arith.constant 0 : index
    %c0_54 = arith.constant 0 : index
    %123 = vector.load %arg4[%c0_53, %c0_54] : memref<64x32xf32, #tpu.memory_space<vmem>>, vector<64x32xf32>
    %c0_55 = arith.constant 0 : index
    %c0_56 = arith.constant 0 : index
    %124 = vector.load %arg5[%c0_55, %c0_56] : memref<32x8xf32, #tpu.memory_space<vmem>>, vector<32x8xf32>
    %cst_57 = arith.constant dense<0.000000e+00> : vector<64x8xf32>
    %125 = tpu.matmul %123, %124, %cst_57 {dimension_numbers = #tpu.dot_dimension_numbers<[1], [0], [0], [1], [0, 0, 1, 1], [], []>} : vector<64x32xf32>, vector<32x8xf32>, vector<64x8xf32> -> vector<64x8xf32>
    %126 = vector.broadcast %2 : vector<1x8xf32> to vector<64x8xf32>
    %127 = arith.addf %125, %126 : vector<64x8xf32>
    %cst_58 = arith.constant 0.000000e+00 : f32
    %128 = vector.broadcast %cst_58 : f32 to vector<64x8xf32>
    %129 = arith.maximumf %127, %128 : vector<64x8xf32>
    %cst_59 = arith.constant dense<0.000000e+00> : vector<64x16xf32>
    %130 = tpu.matmul %129, %1, %cst_59 {dimension_numbers = #tpu.dot_dimension_numbers<[1], [0], [0], [1], [0, 0, 1, 1], [], []>} : vector<64x8xf32>, vector<8x16xf32>, vector<64x16xf32> -> vector<64x16xf32>
    %131 = vector.broadcast %3 : vector<1x16xf32> to vector<64x16xf32>
    %132 = arith.addf %130, %131 : vector<64x16xf32>
    %cst_60 = arith.constant 0.000000e+00 : f32
    %133 = vector.broadcast %cst_60 : f32 to vector<64x16xf32>
    %134 = arith.maximumf %132, %133 : vector<64x16xf32>
    %135 = tpu.iota {dimensions = array<i32: 0>} : vector<16x64xi32>
    %136 = tpu.iota {dimensions = array<i32: 1>} : vector<16x64xi32>
    %c15_i32_61 = arith.constant 15 : i32
    %137 = vector.broadcast %c15_i32_61 : i32 to vector<16x64xi32>
    %138 = arith.andi %136, %137 : vector<16x64xi32>
    %139 = arith.cmpi eq, %138, %135 : vector<16x64xi32>
    %cst_62 = arith.constant 2.500000e-01 : f32
    %cst_63 = arith.constant 0.000000e+00 : f32
    %140 = vector.broadcast %cst_62 : f32 to vector<16x64xf32>
    %141 = vector.broadcast %cst_63 : f32 to vector<16x64xf32>
    %142 = arith.select %139, %140, %141 : vector<16x64xi1>, vector<16x64xf32>
    %cst_64 = arith.constant dense<0.000000e+00> : vector<16x16xf32>
    %143 = tpu.matmul %142, %134, %cst_64 {dimension_numbers = #tpu.dot_dimension_numbers<[1], [0], [0], [1], [0, 0, 1, 1], [], []>} : vector<16x64xf32>, vector<64x16xf32>, vector<16x16xf32> -> vector<16x16xf32>
    %144 = arith.addf %41, %143 : vector<16x16xf32>
    %cst_65 = arith.constant 0.000000e+00 : f32
    %145 = vector.broadcast %cst_65 : f32 to vector<16x16xf32>
    %146 = arith.maximumf %144, %145 : vector<16x16xf32>
    %147 = tpu.iota {dimensions = array<i32: 0>} : vector<16x256xi32>
    %148 = tpu.iota {dimensions = array<i32: 1>} : vector<16x256xi32>
    %c15_i32_66 = arith.constant 15 : i32
    %149 = vector.broadcast %c15_i32_66 : i32 to vector<16x256xi32>
    %150 = arith.andi %148, %149 : vector<16x256xi32>
    %151 = arith.cmpi eq, %150, %147 : vector<16x256xi32>
    %cst_67 = arith.constant 1.000000e+00 : f32
    %cst_68 = arith.constant 0.000000e+00 : f32
    %152 = vector.broadcast %cst_67 : f32 to vector<16x256xf32>
    %153 = vector.broadcast %cst_68 : f32 to vector<16x256xf32>
    %154 = arith.select %151, %152, %153 : vector<16x256xi1>, vector<16x256xf32>
    %cst_69 = arith.constant dense<0.000000e+00> : vector<16x256xf32>
    %155 = tpu.matmul %146, %154, %cst_69 {dimension_numbers = #tpu.dot_dimension_numbers<[1], [0], [0], [1], [0, 0, 1, 1], [], []>} : vector<16x16xf32>, vector<16x256xf32>, vector<16x256xf32> -> vector<16x256xf32>
    %156 = tpu.iota {dimensions = array<i32: 0>} : vector<16x256xi32>
    %157 = tpu.iota {dimensions = array<i32: 1>} : vector<16x256xi32>
    %c-16_i32_70 = arith.constant -16 : i32
    %158 = vector.broadcast %c-16_i32_70 : i32 to vector<16x256xi32>
    %159 = arith.andi %157, %158 : vector<16x256xi32>
    %c16_i32_71 = arith.constant 16 : i32
    %160 = vector.broadcast %c16_i32_71 : i32 to vector<16x256xi32>
    %161 = arith.muli %156, %160 : vector<16x256xi32>
    %162 = arith.cmpi eq, %159, %161 : vector<16x256xi32>
    %cst_72 = arith.constant 0.000000e+00 : f32
    %163 = vector.broadcast %cst_72 : f32 to vector<16x256xf32>
    %164 = arith.select %162, %155, %163 : vector<16x256xi1>, vector<16x256xf32>
    %cst_73 = arith.constant dense<0.000000e+00> : vector<256xf32>
    %165 = vector.multi_reduction <add>, %164, %cst_73 [0] : vector<16x256xf32> to vector<256xf32>
    %166 = vector.shape_cast %165 : vector<256xf32> to vector<1x256xf32>
    %c0_74 = arith.constant 0 : index
    %c0_75 = arith.constant 0 : index
    %c0_76 = arith.constant 0 : index
    %167 = vector.load %arg3[%c0_74, %c0_75, %c0_76] : memref<1x1x256xf32, #tpu.memory_space<vmem>>, vector<1x1x256xf32>
    %168 = vector.shape_cast %167 : vector<1x1x256xf32> to vector<1x256xf32>
    %169 = vector.shape_cast %166 : vector<1x256xf32> to vector<1x1x256xf32>
    tpu.vector_store %arg3[%c0_74, %c0_75, %c0_76], %169 {strides = array<i32>} : memref<1x1x256xf32, #tpu.memory_space<vmem>>, vector<1x1x256xf32>,
    return
  }
  func.func @transform_0(%arg0: i32) -> (i32, i32, i32) {
    %c0_i32 = arith.constant 0 : i32
    %c0_i32_0 = arith.constant 0 : i32
    %c0_i32_1 = arith.constant 0 : i32
    return %arg0, %c0_i32, %c0_i32_0 : i32, i32, i32
  }
  func.func @transform_1(%arg0: i32) -> (i32, i32) {
    %c0_i32 = arith.constant 0 : i32
    %c0_i32_0 = arith.constant 0 : i32
    %c0_i32_1 = arith.constant 0 : i32
    return %c0_i32, %c0_i32_0 : i32, i32
  }
  func.func @transform_2(%arg0: i32) -> (i32, i32, i32) {
    %c0_i32 = arith.constant 0 : i32
    %c0_i32_0 = arith.constant 0 : i32
    %c0_i32_1 = arith.constant 0 : i32
    return %arg0, %c0_i32, %c0_i32_0 : i32, i32, i32
  }
}

</mosaic_0001>

<bundles_post_ra>
// kernel: tpu_custom_call.1
= control target key start
LH: loop header
LB: loop body
LE: loop exit
PB: predicated region body
PF: predicated region fallthrough
CT: control target
= control target key end

     0   :  { %7 = vsyncpa [#allocation5], 0  ;;  %s2167_s0 = inlined_call_operand.hbm [shape: f32[2,16,16], index: 0, kind: input, shape index: {}]   ;;  %s2168_s1 = inlined_call_operand.hbm [shape: f32[24,128], index: 1, kind: input, shape index: {}]   ;;  %s2169_s2 = inlined_call_operand.hbm [shape: f32[2,1,256], index: 2, kind: output, shape index: {}]  }
   0x1   :  { %9 = vsyncpa [#allocation5 + $0x1], 0 }
   0x2   :  { %10 = vsyncpa [#allocation8], 0 }
   0x3   :  { %11 = vsyncpa [#allocation6], 0 }
   0x4   :  { %13 = vsyncpa [#allocation6 + $0x1], 0  ;;  %s1735_s9 = smov 0   ;;  %s1737_s10 = smov 0  }
   0x5   :  { %s1739_s11 = smov 0   ;;  %s1741_s12 = smov 0  }
   0x6 LB: > { %s1756_s13 = sadd.s32 4294967295, %s1707_s12   ;;  %s1296_s14 = sadd.s32 4294967294, %s1707_s12   ;;  %s1707_s12 = sphi %s1741_s12, %s2193_s12   ;;  %s1703_s11 = sphi %s1739_s11, %s2192_s11   ;;  %s1699_s10 = sphi %s1737_s10, %s2191_s10   ;;  %s1695_s9 = sphi %s1735_s9, %s2190_s9  }
   0x7   : > { %p39_p0 = scmp.ne.s32.totalorder %s1699_s10, %s1695_s9  ;;  %p2170_p1 = scmp.eq.s32.totalorder %s1756_s13, 0 }
   0x8   : > { %p90_p3 = scmp.eq.s32.totalorder %s1296_s14, 1  ;;  %p1297_p5 = scmp.ge.s32.totalorder %s1707_s12, 1 }
   0x9   : > { %p1765_p4 = por %p2170_p1, %p39_p0  ;;  %p97_p7 = scmp.lt.s32.totalorder %s1707_s12, 3 }
   0xa   : > { %p1770_p6 = por %p90_p3, %p39_p0  ;;  %s1709_s18 = smov [#allocation7]  }
   0xb   : > { %s2173_s15 = scalar_select %p1765_p4, 1, 0 }
   0xc   : > { %s2174_s16 = scalar_select %p1770_p6, 1, 0 }
   0xd   : > { %p1775_p8 = pnand %p1297_p5, %p97_p7  ;;  %s109_s19 = sshll.u32 %s1709_s18, 4  ;;  %s1779_s19 = int_to_ptr.vmem [resolvable:$true] %s109_s19 }
   0xe   : > { %s1791_s21 = sadd.s32 1, %s1707_s12   ;;  %s26_s22 = sadd.s32 1, %s1703_s11 }
   0xf   : > { %s2175_s17 = scalar_select %p1775_p8, 1, 0 }
  0x10   : > { %p1502_p9 = pneg %p1775_p8  ;;  %s23_s23 = ssub.s32 %s1707_s12, %s1791_s21 }
  0x11   : > { %s1579_s26 = scalar_lea.hbm %s2168_s1, 384 }
  0x12   : > { %p1786_p11 = pnand %p1502_p9, %p2170_p1  ;;  %p1580_p12 = scmp.ne.s32.totalorder %s2168_s1, %s1579_s26 }
  0x13   : > { %p1586_p5 = scmp.lt.u32.totalorder %s1579_s26, %s2168_s1 }
  0x14   : > { %p1581_p13 = pneg %p1786_p11 }
  0x16   : > { %p1582_p0 = pnand %p1581_p13, %p1580_p12 }
  0x18   : > { %p1583_p3 = pneg %p1582_p0 }
  0x1a   : > { %p1588_p7 = pnand %p1586_p5, %p1583_p3 }
  0x1c   : > { %1591 = shalt.err (!%p1588_p7)
}
  0x1d   : > { %s1592_s3 = scalar_lea.vmem %s1779_s19, 384  ;;  %p1600_p2 = scmp.lt.s32.totalorder %s1779_s19, %s1779_s19 }
  0x1e   : > { %p1593_p9 = scmp.ne.s32.totalorder %s1779_s19, %s1592_s3  ;;  %p1601_p6 = scmp.lt.s32.totalorder %s1592_s3, %s1592_s3 }
  0x20   : > { %p1595_p10 = pnand %p1593_p9, %p1581_p13  ;;  %p1602_p4 = por %p1601_p6, %p1600_p2 }
  0x22   : > { %p1596_p1 = pneg %p1595_p10 }
  0x24   : > { %p1603_p8 = pnand %p1602_p4, %p1596_p1 }
  0x26   : > { %1606 = shalt.err (!%p1603_p8)
}
  0x27   : > { %s1710_s4 = smov 128   ;;  %s1711_s5 = smov 8  }
  0x28   : > { %1505 = dma.hbm_to_vmem [thread:$0]  (!%p1786_p11), %s2168_s1, 384, %s1779_s19, [#allocation8], %s1710_s4, %s1710_s4, %s1711_s5  }
  0x29   : > { %p24_p1 = scmp.eq.s32.totalorder %s23_s23, 0  ;;  %p33_p2 = scmp.ne.s32.totalorder %s1703_s11, %s1699_s10 }
  0x2a   : > { %p34_p4 = scmp.eq.s32.totalorder %s1707_s12, 0  ;;  %p1515_p6 = scmp.lt.s32.totalorder %s1707_s12, 2 }
  0x2b   : > { %s1825_s8 = scalar_select %p24_p1, %s1703_s11, %s26_s22  }
  0x2c   : > { %p35_p8 = por %p34_p4, %p33_p2  ;;  %p2177_p10 = scmp.eq.s32.totalorder %s1756_s13, 1 }
  0x2d   : > { %s123_s18 = sand.u32 1, %s1703_s11   ;;  %s1353_s20 = sshll.u32 %s1707_s12, 8 }
  0x2e   : > { %p1829_p12 = por %p2177_p10, %p33_p2  ;;  %s1300_s24 = sshll.u32 %s123_s18, 4 }
  0x2f   : > { %s1838_s27 = scalar_lea.hbm %s2167_s0, %s1353_s20  ;;  %s127_s19 = scalar_lea.vmem [#allocation4], %s1300_s24 }
  0x30   : > { %s134_s22 = sshll.u32 %s127_s19, 4  ;;  %p1840_p11 = pnand %p1515_p6, %p35_p8  ;;  %s1844_s22 = int_to_ptr.vmem [resolvable:$true] %s134_s22 }
  0x31   : > { %s1846_s28 = scalar_lea.sflag [#allocation5], %s123_s18  ;;  %s1607_s29 = scalar_lea.hbm %s1838_s27, 256 }
  0x32   : > { %p1608_p13 = scmp.ne.s32.totalorder %s1838_s27, %s1607_s29  ;;  %p1609_p0 = pneg %p1840_p11 }
  0x33   : > { %s1612_s6 = scalar_lea.hbm %s2167_s0, 512  ;;  %p1613_p7 = scmp.lt.u32.totalorder %s1838_s27, %s2167_s0 }
  0x34   : > { %p1610_p3 = pnand %p1609_p0, %p1608_p13  ;;  %p1614_p9 = scmp.lt.u32.totalorder %s1612_s6, %s1607_s29 }
  0x35   : > { %p1616_p2 = scmp.lt.u32.totalorder %s1607_s29, %s1838_s27 }
  0x36   : > { %p1611_p5 = pneg %p1610_p3  ;;  %p1615_p1 = por %p1614_p9, %p1613_p7 }
  0x38   : > { %p1617_p4 = por %p1616_p2, %p1615_p1 }
  0x3a   : > { %p1618_p6 = pnand %p1617_p4, %p1611_p5 }
  0x3c   : > { %1621 = shalt.err (!%p1618_p6)
}
  0x3d   : > { %s1622_s18 = scalar_lea.vmem %s1844_s22, 256  ;;  %s1712_s24 = smov [#allocation4]  }
  0x3e   : > { %p1623_p8 = scmp.ne.s32.totalorder %s1844_s22, %s1622_s18  ;;  %s1627_s25 = sshll.u32 %s1712_s24, 4  ;;  %s1628_s25 = int_to_ptr.vmem [resolvable:$false] %s1627_s25 }
  0x3f   : > { %s1629_s26 = scalar_lea.vmem %s1628_s25, 512  ;;  %p1630_p3 = scmp.lt.s32.totalorder %s1844_s22, %s1628_s25 }
  0x40   : > { %p1625_p10 = pnand %p1623_p8, %p1609_p0  ;;  %p1631_p7 = scmp.lt.s32.totalorder %s1629_s26, %s1622_s18 }
  0x42   : > { %p1626_p13 = pneg %p1625_p10  ;;  %p1632_p9 = por %p1631_p7, %p1630_p3 }
  0x44   : > { %p1633_p1 = pnand %p1632_p9, %p1626_p13 }
  0x46   : > { %1636 = shalt.err (!%p1633_p1)
}
  0x47   : > { %1509 = dma.hbm_to_vmem [thread:$0]  (!%p1840_p11), %s1838_s27, 256, %s1844_s22, %s1846_s28, %s1710_s4, %s1710_s4, %s1711_s5  }
  0x48   : > { %p2180_p0 = scmp.ne.s32.totalorder %s2175_s17, 0 }
  0x49   : > { %s1880_s19 = sand.u32 (!%p2180_p0), 1, %s1699_s10   ;;  %p2181_p5 = scmp.ne.s32.totalorder (!%p2180_p0), %s2173_s15, 0 }
  0x4a   : > { %146 = sbr.rel (%p2180_p0) target bundleno = 2693 (0xa85), region = 28  ;;  %s1304_s29 = sshll.u32 (!%p2180_p0), %s1880_s19, 4 }
  0x4b   : > { %s149_s30 = scalar_lea.sflag (!%p2180_p0), [#allocation5], %s1880_s19  ;;  %s152_s3 = scalar_lea.vmem (!%p2180_p0), [#allocation4], %s1304_s29 }
  0x51   : > { %1682 = dma.done.wait (%p2181_p5), %s149_s30, 256  }
  0x52   : > { %1684 = vsyncadd (%p2181_p5), %s149_s30, 4294967040  ;;  %p2182_p2 = scmp.eq.s32.totalorder %s1756_s13, 0 }
  0x54   : > { %1686 = dma.done.wait (%p2182_p2), [#allocation8], 384   ;;  %p2183_p11 = pmov %p2182_p2 }
  0x55   : > { %vm191_vm0 = vcmask 64512   ;;  %v1892_v0 = vld [vmem:[%s152_s3] sm:$0xff]  ;;  %v1894_v1 = vld [vmem:[%s152_s3 + $0x8] sm:$0xff]  ;;  %v184_v3 = vlaneseq  ;;  %vm275_vm3 = vcmask 130048   ;;  %v1713_v62 = vmov 0.0   ;;  %s1714_s15 = smov 120  }
  0x56   : > { %1688 = vsyncadd (%p2183_p11), [#allocation8], 4294966912  ;;  %v1458_v2 = vpack.c.bf16 %v1894_v1, %v1892_v0  ;;  %1397 = vmatprep.mubr.msk.f32.mxu0 %vm191_vm0, %v1892_v0  ;;  %s1715_s17 = smov 16   ;;  %s1717_s4 = smov 112  }
  0x57   : > { %vm1459_vm1 = vmpackc.low %vm191_vm0, %vm191_vm0  ;;  %v1905_v4 = vshrl.u32 %v184_v3, 7  ;;  %v1911_v6 = vand.u32 127, %v184_v3  ;;  %s1306_s5 = sshll.u32 %s1880_s19, 1  ;;  %s1354_s27 = sshll.u32 %s1756_s13, 5 }
  0x58   : > { %1460 = vmatprep.subr.msk.bf16.mxu0 %vm1459_vm1, %v1458_v2  ;;  %s176_s22 = scalar_lea.vmem [#allocation9], %s1306_s5  ;;  %s2123_s7 = scalar_lea.hbm %s2169_s2, %s1354_s27 }
  0x59   : > { %1463 = vmatpush3.bf16.xpose.msk.msra.mxu0 %vm1459_vm1, %v1458_v2  ;;  %v1908_v5 = vadd.s32 8, %v1905_v4  ;;  %vm189_vm4 = vcmp.eq.s32.totalorder %v1905_v4, %v1911_v6  ;;  %v299_v26 = vsub.s32 15, %v1911_v6  ;;  %s1216_s23 = sshll.u32 %s176_s22, 4  ;;  %s1202_s20 = scalar_lea.sflag [#allocation6], %s1880_s19  ;;  %s2125_s23 = int_to_ptr.vmem [resolvable:$true] %s1216_s23 }
  0x5a   : > { %s1637_s18 = scalar_lea.vmem %s2125_s23, 32  ;;  %s1719_s13 = smov [#allocation9]  }
  0x5b   : > { %vm190_vm2 = vcmp.eq.s32.totalorder %v1908_v5, %v1911_v6  ;;  %p1638_p4 = scmp.ne.s32.totalorder %s2125_s23, %s1637_s18  ;;  %s1641_s24 = sshll.u32 %s1719_s13, 4  ;;  %s1642_s24 = int_to_ptr.vmem [resolvable:$false] %s1641_s24 }
  0x5c   : > { %s1643_s25 = scalar_lea.vmem %s1642_s24, 64  ;;  %p1644_p10 = scmp.lt.s32.totalorder %s2125_s23, %s1642_s24 }
  0x5d   : > { %p1639_p6 = pnand %p1638_p4, %p1829_p12  ;;  %p1645_p13 = scmp.lt.s32.totalorder %s1643_s25, %s1637_s18 }
  0x5f   : > { %p1640_p8 = pneg %p1639_p6  ;;  %p1646_p3 = por %p1645_p13, %p1644_p10 }
  0x60   : > { %1398 = vmatmul.mubr.msk.f32.vlgmr.msra.gmra.mrb[0].mxu0 %vm191_vm0, %v1894_v1 }
  0x61   : > { %p1647_p7 = pnand %p1646_p3, %p1640_p8 }
 0x133   : > { %v1399_v7 = vpop.f32.mrb[0].mxu0 }
 0x134   : > { %v274_v8 = vsel %vm190_vm2, %v1399_v7, 0.0  ;;  %v264_v9 = vpop.f32.mrb[1].mxu0  ;;  %v286_v19 = vmul.f32 2.0, %v1399_v7 }
 0x135   : > { %v277_v10 = vsel %vm275_vm3, %v274_v8, 0.0  ;;  %v273_v11 = vsel %vm189_vm4, %v264_v9, 0.0  ;;  %v285_v21 = vmul.f32 2.0, %v264_v9 }
 0x136   : > { %v276_v12 = vsel %vm275_vm3, %v273_v11, 0.0 }
 0x137   : > { %v278_v13 = vadd.f32 %v277_v10, %v276_v12 }
 0x139   : > { %v279_v14 = vrot.slane %v278_v13, 4 }
 0x13b   : > { %v280_v15 = vadd.f32 %v279_v14, %v278_v13 }
 0x13d   : > { %v281_v16 = vrot.slane %v280_v15, 2 }
 0x13f   : > { %v282_v17 = vadd.f32 %v281_v16, %v280_v15 }
 0x141   : > { %v283_v18 = vrot.slane %v282_v17, 1 }
 0x143   : > { %v284_v20 = vadd.f32 %v283_v18, %v282_v17 }
 0x145   : > { %v287_v22 = vsub.f32 %v285_v21, %v284_v20  ;;  %v288_v23 = vsub.f32 %v286_v19, %v284_v20 }
 0x147   : > { %vm291_vm5 = vcmp.lt.s32.totalorder %v287_v22, 0  ;;  %v293_v24 = vsub.s32 2147483648, %v287_v22  ;;  %v294_v25 = vsub.s32 2147483648, %v288_v23  ;;  %vm292_vm6 = vcmp.lt.s32.totalorder %v288_v23, 0 }
 0x149   : > { %v295_v27 = vsel %vm291_vm5, %v293_v24, %v287_v22  ;;  %v296_v28 = vsel %vm292_vm6, %v294_v25, %v288_v23  ;;  %v177_v24 = vld [vmem:[#allocation7] sm:$0xff] }
 0x14a   : > { %v297_v29 = vand.u32 4294967280, %v295_v27  ;;  %v298_v30 = vand.u32 4294967280, %v296_v28  ;;  %1400 = vmatprep.subr.mxu1 %v177_v24 }
 0x14b   : > { %1401 = vmatpush3.msra.mxu1 %v177_v24 }
 0x14c   : > { %v300_v31 = vor.u32 %v299_v26, %v297_v29  ;;  %v301_v32 = vor.u32 %v299_v26, %v298_v30 }
 0x14e   : > { %v302_v33 = vsel %vm189_vm4, 2147483648, %v300_v31  ;;  %v303_v34 = vsel %vm190_vm2, 2147483648, %v301_v32 }
 0x14f   : > { %v480_v35 = vsel %vm275_vm3, %v302_v33, 2147483648  ;;  %v495_v36 = vsel %vm275_vm3, %v303_v34, 2147483648 }
 0x150   : > { %v482_v37 = vshra.s32 %v480_v35, 16  ;;  %v497_v39 = vshra.s32 %v495_v36, 16  ;;  %v481_v41 = vand.u32 65535, %v480_v35  ;;  %v496_v44 = vand.u32 65535, %v495_v36 }
 0x152   : > { %v484_v38 = vcvt.s32.f32 %v482_v37  ;;  %v499_v40 = vcvt.s32.f32 %v497_v39  ;;  %v483_v43 = vcvt.s32.f32 %v481_v41  ;;  %v498_v47 = vcvt.s32.f32 %v496_v44 }
 0x154   : > { %485 = vmax.xlane.f32.xlu0 %v484_v38 }
 0x158   : > { %500 = vmax.xlane.f32.xlu0 %v499_v40 }
 0x1e1   : > { %v486_v42 = vpop.xlane.xlu0 %485 }
 0x1e2   : > { %vm487_vm7 = vcmp.eq.f32.partialorder %v484_v38, %v486_v42  ;;  %v492_v49 = vcvt.f32.s32 %v486_v42 }
 0x1e3   : > { %v488_v45 = vsel %vm487_vm7, %v483_v43, -inf }
 0x1e4   : > { %489 = vmax.xlane.f32.xlu1 %v488_v45  ;;  %v493_v51 = vshll.u32 %v492_v49, 16 }
 0x1e5   : > { %v501_v46 = vpop.xlane.xlu0 %500 }
 0x1e6   : > { %vm502_vm8 = vcmp.eq.f32.partialorder %v499_v40, %v501_v46  ;;  %v507_v52 = vcvt.f32.s32 %v501_v46 }
 0x1e7   : > { %v503_v48 = vsel %vm502_vm8, %v498_v47, -inf }
 0x1e8   : > { %504 = vmax.xlane.f32.xlu1 %v503_v48  ;;  %v508_v56 = vshll.u32 %v507_v52, 16 }
 0x271   : > { %v490_v50 = vpop.xlane.xlu1 %489 }
 0x272   : > { %v491_v53 = vcvt.f32.s32 %v490_v50 }
 0x274   : > { %v494_v54 = vadd.s32 %v493_v51, %v491_v53 }
 0x275   : > { %v505_v55 = vpop.xlane.xlu1 %504 }
 0x276   : > { %v510_v57 = vand.u32 15, %v494_v54  ;;  %v506_v58 = vcvt.f32.s32 %v505_v55 }
 0x278   : > { %v512_v59 = vsub.s32 15, %v510_v57  ;;  %v509_v60 = vadd.s32 %v508_v56, %v506_v58 }
 0x27a   : > { %vm514_vm9 = vcmp.eq.s32.totalorder %v1911_v6, %v512_v59  ;;  %v511_v61 = vand.u32 15, %v509_v60 }
 0x27b   : > { %v1936_v63 = vsel %vm514_vm9, 1.0, %v1713_v62 }
 0x27c   : > { %v513_v2 = vsub.s32 15, %v511_v61  ;;  %vm522_vm10 = vcmp.gt.f32.partialorder %v1936_v63, 0.0 }
 0x27d   : > { %v524_v7 = vsel %vm522_vm10, 2147483648, %v302_v33 }
 0x27e   : > { %vm515_vm11 = vcmp.eq.s32.totalorder %v1911_v6, %v513_v2  ;;  %v526_v8 = vsel %vm275_vm3, %v524_v7, 2147483648 }
 0x27f   : > { %v528_v9 = vshra.s32 %v526_v8, 16  ;;  %v1942_v10 = vsel %vm515_vm11, 1.0, %v1713_v62  ;;  %v527_v16 = vand.u32 65535, %v526_v8 }
 0x280   : > { %vm523_vm12 = vcmp.gt.f32.partialorder %v1942_v10, 0.0 }
 0x281   : > { %v530_v11 = vcvt.s32.f32 %v528_v9  ;;  %v525_v12 = vsel %vm523_vm12, 2147483648, %v303_v34  ;;  %v529_v18 = vcvt.s32.f32 %v527_v16 }
 0x282   : > { %v541_v13 = vsel %vm275_vm3, %v525_v12, 2147483648 }
 0x283   : > { %531 = vmax.xlane.f32.xlu0 %v530_v11  ;;  %v543_v14 = vshra.s32 %v541_v13, 16  ;;  %v542_v19 = vand.u32 65535, %v541_v13 }
 0x285   : > { %v545_v15 = vcvt.s32.f32 %v543_v14  ;;  %v544_v22 = vcvt.s32.f32 %v542_v19 }
 0x287   : > { %546 = vmax.xlane.f32.xlu1 %v545_v15 }
 0x310   : > { %v532_v17 = vpop.xlane.xlu0 %531 }
 0x311   : > { %vm533_vm13 = vcmp.eq.f32.partialorder %v530_v11, %v532_v17  ;;  %v538_v25 = vcvt.f32.s32 %v532_v17 }
 0x312   : > { %v534_v20 = vsel %vm533_vm13, %v529_v18, -inf }
 0x313   : > { %535 = vmax.xlane.f32.xlu0 %v534_v20  ;;  %v539_v27 = vshll.u32 %v538_v25, 16 }
 0x314   : > { %v547_v21 = vpop.xlane.xlu1 %546 }
 0x315   : > { %vm548_vm14 = vcmp.eq.f32.partialorder %v545_v15, %v547_v21  ;;  %v553_v28 = vcvt.f32.s32 %v547_v21 }
 0x316   : > { %v549_v23 = vsel %vm548_vm14, %v544_v22, -inf }
 0x317   : > { %550 = vmax.xlane.f32.xlu1 %v549_v23  ;;  %v554_v33 = vshll.u32 %v553_v28, 16  ;;  %v415_v28 = vand.u32 15, %v1905_v4 }
 0x319   : > { %vm423_vm11 = vcmp.eq.s32.totalorder %v415_v28, %v1911_v6 }
 0x328   : > { %306 = vrot.lane.b32.xlu1 %v1894_v1, %s1714_s15 }
 0x329   : > { %304 = vrot.lane.b32.xlu0 %v1892_v0, %s1714_s15 }
 0x3a0   : > { %v536_v26 = vpop.xlane.xlu0 %535 }
 0x3a1   : > { %v537_v29 = vcvt.f32.s32 %v536_v26 }
 0x3a3   : > { %v540_v30 = vadd.s32 %v539_v27, %v537_v29  ;;  %v416_v29 = vand.u32 15, %v1908_v5 }
 0x3a4   : > { %v551_v31 = vpop.xlane.xlu1 %550  ;;  %v305_v32 = vpop.permute.xlu0 %304 }
 0x3a5   : > { %v556_v34 = vand.u32 15, %v540_v30  ;;  %v552_v35 = vcvt.f32.s32 %v551_v31  ;;  %1402 = vmatprep.mubr.msk.f32.mxu1 %vm191_vm0, %v305_v32  ;;  %v409_v30 = vadd.s32 16, %v1905_v4  ;;  %v410_v31 = vadd.s32 24, %v1905_v4 }
 0x3a6   : > { %vm424_vm12 = vcmp.eq.s32.totalorder %v416_v29, %v1911_v6 }
 0x3a7   : > { %v558_v1 = vsub.s32 15, %v556_v34  ;;  %v555_v36 = vadd.s32 %v554_v33, %v552_v35  ;;  %v417_v32 = vand.u32 15, %v409_v30  ;;  %v418_v33 = vand.u32 15, %v410_v31 }
 0x3a8   : > { %v307_v37 = vpop.permute.xlu1 %306  ;;  %v431_v34 = vsel %vm423_vm11, 1.0, %v1713_v62  ;;  %v432_v35 = vsel %vm424_vm12, 1.0, %v1713_v62 }
 0x3a9   : > { %vm560_vm15 = vcmp.eq.s32.totalorder %v1911_v6, %v558_v1  ;;  %v557_v0 = vand.u32 15, %v555_v36  ;;  %1403 = vmatmul.mubr.msk.f32.vlgmr.msra.gmra.mrb[0].mxu1 %vm191_vm0, %v307_v37  ;;  %vm425_vm13 = vcmp.eq.s32.totalorder %v417_v32, %v1911_v6  ;;  %vm426_vm14 = vcmp.eq.s32.totalorder %v418_v33, %v1911_v6 }
 0x3aa   : > { %v1954_v38 = vsel %vm560_vm15, 1.0, %v1713_v62  ;;  %v1559_v1 = vpack.i.bf16 %v432_v35, %v431_v34  ;;  %v433_v36 = vsel %vm425_vm13, 1.0, %v1713_v62  ;;  %v434_v37 = vsel %vm426_vm14, 1.0, %v1713_v62 }
 0x3ab   : > { %v559_v39 = vsub.s32 15, %v557_v0  ;;  %vm569_vm1 = vcmp.gt.f32.partialorder %v1954_v38, 0.0  ;;  %v1564_v0 = vpack.i.bf16 %v434_v37, %v433_v36 }
 0x3ac   : > { %v571_v40 = vsel %vm569_vm1, 2147483648, %v524_v7 }
 0x3ad   : > { %vm561_vm2 = vcmp.eq.s32.totalorder %v1911_v6, %v559_v39  ;;  %v573_v41 = vsel %vm275_vm3, %v571_v40, 2147483648 }
 0x3ae   : > { %v575_v42 = vshra.s32 %v573_v41, 16  ;;  %v1960_v43 = vsel %vm561_vm2, 1.0, %v1713_v62  ;;  %v574_v49 = vand.u32 65535, %v573_v41  ;;  %vm471_vm2 = vcmask 261248  }
 0x3af   : > { %vm570_vm4 = vcmp.gt.f32.partialorder %v1960_v43, 0.0 }
 0x3b0   : > { %v577_v44 = vcvt.s32.f32 %v575_v42  ;;  %v572_v45 = vsel %vm570_vm4, 2147483648, %v525_v12  ;;  %v576_v51 = vcvt.s32.f32 %v574_v49  ;;  %v411_v49 = vadd.s32 32, %v1905_v4 }
 0x3b1   : > { %v588_v46 = vsel %vm275_vm3, %v572_v45, 2147483648 }
 0x3b2   : > { %578 = vmax.xlane.f32.xlu1 %v577_v44  ;;  %v590_v47 = vshra.s32 %v588_v46, 16  ;;  %v589_v52 = vand.u32 65535, %v588_v46 }
 0x3b4   : > { %v592_v48 = vcvt.s32.f32 %v590_v47  ;;  %v591_v55 = vcvt.s32.f32 %v589_v52  ;;  %v414_v52 = vadd.s32 56, %v1905_v4 }
 0x3b6   : > { %593 = vmax.xlane.f32.xlu0 %v592_v48 }
 0x43f   : > { %v579_v50 = vpop.xlane.xlu1 %578 }
 0x440   : > { %vm580_vm5 = vcmp.eq.f32.partialorder %v577_v44, %v579_v50  ;;  %v585_v59 = vcvt.f32.s32 %v579_v50  ;;  %v412_v50 = vadd.s32 40, %v1905_v4 }
 0x441   : > { %v581_v53 = vsel %vm580_vm5, %v576_v51, -inf  ;;  %v413_v51 = vadd.s32 48, %v1905_v4 }
 0x442   : > { %582 = vmax.xlane.f32.xlu0 %v581_v53  ;;  %v586_v61 = vshll.u32 %v585_v59, 16  ;;  %v422_v59 = vand.u32 15, %v414_v52 }
 0x443   : > { %v594_v54 = vpop.xlane.xlu0 %593 }
 0x444   : > { %vm595_vm6 = vcmp.eq.f32.partialorder %v592_v48, %v594_v54  ;;  %v600_v2 = vcvt.f32.s32 %v594_v54  ;;  %v419_v54 = vand.u32 15, %v411_v49 }
 0x445   : > { %v596_v56 = vsel %vm595_vm6, %v591_v55, -inf  ;;  %v420_v55 = vand.u32 15, %v412_v50 }
 0x446   : > { %597 = vmax.xlane.f32.xlu1 %v596_v56  ;;  %v601_v11 = vshll.u32 %v600_v2, 16  ;;  %v421_v56 = vand.u32 15, %v413_v51  ;;  %vm427_vm4 = vcmp.eq.s32.totalorder %v419_v54, %v1911_v6  ;;  %v1322_v51 = vld [vmem:[#allocation7 + $0x10] ss:$0 sm:$0xff] }
 0x447   : > { %vm428_vm5 = vcmp.eq.s32.totalorder %v420_v55, %v1911_v6 }
 0x448   : > { %vm429_vm6 = vcmp.eq.s32.totalorder %v421_v56, %v1911_v6 }
 0x47c   : > { %v1964_v57 = vpop.f32.mrb[0].mxu1 }
 0x47d   : > { %398 = vst.msk [vmem:[#allocation3 + $0x18] sm:$0xff] %vm191_vm0, %v1964_v57  ;;  %v1968_v58 = vpop.f32.mrb[1].mxu1 }
 0x47e   : > { %397 = vst.msk [vmem:[#allocation3 + $0x10] sm:$0xff] %vm191_vm0, %v1968_v58 }
 0x4cf   : > { %v583_v60 = vpop.xlane.xlu0 %582 }
 0x4d0   : > { %v584_v7 = vcvt.f32.s32 %v583_v60 }
 0x4d2   : > { %v587_v8 = vadd.s32 %v586_v61, %v584_v7  ;;  %v674_v7 = vld [vmem:[#allocation3 + $0x18] sm:$0xff] }
 0x4d3   : > { %v598_v9 = vpop.xlane.xlu1 %597 }
 0x4d4   : > { %v603_v12 = vand.u32 15, %v587_v8  ;;  %v599_v13 = vcvt.f32.s32 %v598_v9 }
 0x4d6   : > { %v605_v14 = vsub.s32 15, %v603_v12  ;;  %v602_v15 = vadd.s32 %v601_v11, %v599_v13  ;;  %v673_v12 = vld [vmem:[#allocation3 + $0x10] sm:$0xff] }
 0x4d8   : > { %vm607_vm7 = vcmp.eq.s32.totalorder %v1911_v6, %v605_v14  ;;  %v604_v16 = vand.u32 15, %v602_v15 }
 0x4d9   : > { %v1974_v17 = vsel %vm607_vm7, 1.0, %v1713_v62  ;;  %vm430_vm7 = vcmp.eq.s32.totalorder %v422_v59, %v1911_v6 }
 0x4da   : > { %v606_v18 = vsub.s32 15, %v604_v16  ;;  %vm616_vm8 = vcmp.gt.f32.partialorder %v1974_v17, 0.0  ;;  %v435_v16 = vsel %vm427_vm4, 1.0, %v1713_v62 }
 0x4db   : > { %v618_v19 = vsel %vm616_vm8, 2147483648, %v571_v40  ;;  %vm679_vm8 = vcmask 261120  }
 0x4dc   : > { %vm608_vm9 = vcmp.eq.s32.totalorder %v1911_v6, %v606_v18  ;;  %v620_v20 = vsel %vm275_vm3, %v618_v19, 2147483648  ;;  %v436_v18 = vsel %vm428_vm5, 1.0, %v1713_v62  ;;  %v437_v19 = vsel %vm429_vm6, 1.0, %v1713_v62 }
 0x4dd   : > { %v622_v21 = vshra.s32 %v620_v20, 16  ;;  %v1980_v22 = vsel %vm608_vm9, 1.0, %v1713_v62  ;;  %v621_v39 = vand.u32 65535, %v620_v20  ;;  %v438_v20 = vsel %vm430_vm7, 1.0, %v1713_v62 }
 0x4de   : > { %vm617_vm10 = vcmp.gt.f32.partialorder %v1980_v22, 0.0 }
 0x4df   : > { %v624_v23 = vcvt.s32.f32 %v622_v21  ;;  %v619_v24 = vsel %vm617_vm10, 2147483648, %v572_v45  ;;  %v623_v41 = vcvt.s32.f32 %v621_v39  ;;  %v1574_v21 = vpack.i.bf16 %v438_v20, %v437_v19 }
 0x4e0   : > { %v635_v25 = vsel %vm275_vm3, %v619_v24, 2147483648 }
 0x4e1   : > { %625 = vmax.xlane.f32.xlu0 %v624_v23  ;;  %v637_v26 = vshra.s32 %v635_v25, 16  ;;  %v636_v42 = vand.u32 65535, %v635_v25  ;;  %v1313_v25 = vld [vmem:[#allocation7 + $0x12] ss:$0 sm:$0xff] }
 0x4e3   : > { %v639_v27 = vcvt.s32.f32 %v637_v26  ;;  %v638_v47 = vcvt.s32.f32 %v636_v42  ;;  %v178_v26 = vld [vmem:[#allocation7 + $0x8] sm:$0xff] }
 0x4e4   : > { %1425 = vmatprep.subr.mxu0 %v178_v26 }
 0x4e5   : > { %640 = vmax.xlane.f32.xlu1 %v639_v27  ;;  %1426 = vmatpush3.msra.mxu0 %v178_v26 }
 0x4f6   : > { %391 = vrot.lane.b32.xlu1 %v1964_v57, %s1714_s15 }
 0x4f7   : > { %389 = vrot.lane.b32.xlu0 %v1968_v58, %s1714_s15 }
 0x4fa   : > { %1560 = vrot.lane.b32.xlu1 %v1559_v1, %s1715_s17 }
 0x4fe   : > { %1565 = vrot.lane.b32.xlu1 %v1564_v0, %s1715_s17 }
 0x56e   : > { %v2002_v40 = vpop.xlane.xlu0 %625 }
 0x56f   : > { %vm627_vm15 = vcmp.eq.f32.partialorder %v624_v23, %v2002_v40 }
 0x570   : > { %v628_v44 = vsel %vm627_vm15, %v623_v41, -inf }
 0x571   : > { %629 = vmax.xlane.f32.xlu0 %v628_v44 }
 0x572   : > { %v2005_v45 = vpop.xlane.xlu1 %640  ;;  %v390_v46 = vpop.permute.xlu0 %389 }
 0x573   : > { %395 = vst.msk [vmem:[#allocation3] sm:$0xff] %vm191_vm0, %v390_v46  ;;  %vm642_vm1 = vcmp.eq.f32.partialorder %v639_v27, %v2005_v45  ;;  %v632_v27 = vcvt.f32.s32 %v2002_v40  ;;  %v647_v28 = vcvt.f32.s32 %v2005_v45 }
 0x574   : > { %v643_v48 = vsel %vm642_vm1, %v638_v47, -inf }
 0x575   : > { %644 = vmax.xlane.f32.xlu1 %v643_v48  ;;  %v633_v30 = vshll.u32 %v632_v27, 16  ;;  %v648_v33 = vshll.u32 %v647_v28, 16 }
 0x576   : > { %v392_v53 = vpop.permute.xlu1 %391 }
 0x577   : > { %396 = vst.msk [vmem:[#allocation3 + $0x8] sm:$0xff] %vm191_vm0, %v392_v53 }
 0x57a   : > { %v1561_v60 = vpop.permute.xlu1 %1560  ;;  %v671_v9 = vld [vmem:[#allocation3] sm:$0xff] }
 0x57b   : > { %v1563_v61 = vunpack.i.h.bf16 %v1561_v60  ;;  %v1562_v2 = vunpack.i.l.bf16 %v1561_v60 }
 0x57d   : > { %473 = vst.msk [vmem:[#allocation2 + $0x8] sm:$0xff] %vm471_vm2, %v1563_v61  ;;  %472 = vst.msk [vmem:[#allocation2] sm:$0xff] %vm471_vm2, %v1562_v2 }
 0x57e   : > { %521 = vst.msk [vmem:[#allocation2 + $0x8] sm:$0xff] %vm275_vm3, %v1942_v10  ;;  %520 = vst.msk [vmem:[#allocation2] sm:$0xff] %vm275_vm3, %v1936_v63  ;;  %v1566_v8 = vpop.permute.xlu1 %1565  ;;  %v672_v11 = vld [vmem:[#allocation3 + $0x8] sm:$0xff]  ;;  %v1468_v63 = vpack.c.bf16 %v674_v7, %v673_v12  ;;  %v1569_v10 = vpack.i.bf16 %v436_v18, %v435_v16 }
 0x57f   : > { %v1568_v13 = vunpack.i.h.bf16 %v1566_v8  ;;  %v1567_v14 = vunpack.i.l.bf16 %v1566_v8  ;;  %v1464_v15 = vpack.c.bf16 %v672_v11, %v671_v9 }
 0x581   : > { %475 = vst.msk [vmem:[#allocation2 + $0x18] sm:$0xff] %vm471_vm2, %v1568_v13  ;;  %474 = vst.msk [vmem:[#allocation2 + $0x10] sm:$0xff] %vm471_vm2, %v1567_v14  ;;  %1465 = vmatprep.subr.bf16.mxu1 %v1464_v15 }
 0x582   : > { %568 = vst.msk [vmem:[#allocation2 + $0x18] sm:$0xff] %vm275_vm3, %v1960_v43  ;;  %567 = vst.msk [vmem:[#allocation2 + $0x10] sm:$0xff] %vm275_vm3, %v1954_v38  ;;  %1467 = vmatpush3.bf16.msra.mxu1 %v1464_v15 }
 0x583   : > { %1469 = vmatprep.subr.bf16.mxu1 %v1468_v63 }
 0x585   : > { %v663_v23 = vld [vmem:[#allocation2] sm:$0xff]  ;;  %v664_v24 = vld [vmem:[#allocation2 + $0x8] sm:$0xff] }
 0x586   : > { %1471 = vmatpush3.bf16.msra.mxu1 %v1468_v63  ;;  %1413 = vmatprep.mubr.msk.f32.mxu1 %vm679_vm8, %v663_v23  ;;  %v1331_v23 = vld [vmem:[#allocation7 + $0x11] ss:$0 sm:$0xff] }
 0x587   : > { %1570 = vrot.lane.b32.xlu0 %v1569_v10, %s1715_s17  ;;  %1575 = vrot.lane.b32.xlu1 %v1574_v21, %s1715_s17 }
 0x589   : > { %1414 = vmatmul.mubr.msk.f32.vlgmr.msra.gmra.mrb[2].mxu1 %vm679_vm8, %v664_v24  ;;  %v665_v43 = vld [vmem:[#allocation2 + $0x10] sm:$0xff]  ;;  %v666_v38 = vld [vmem:[#allocation2 + $0x18] sm:$0xff] }
 0x58a   : > { %1416 = vmatprep.mubr.msk.f32.mxu1 %vm679_vm8, %v665_v43 }
 0x58b   : > { %404 = vrot.lane.b32.xlu0 %v1313_v25, %s1715_s17 }
 0x58d   : > { %1417 = vmatmul.mubr.msk.f32.gmra.mrb[4].mxu1 %vm679_vm8, %v666_v38 }
 0x5fe   : > { %v630_v29 = vpop.xlane.xlu0 %629 }
 0x5ff   : > { %v631_v31 = vcvt.f32.s32 %v630_v29 }
 0x601   : > { %v634_v32 = vadd.s32 %v633_v30, %v631_v31 }
 0x602   : > { %v645_v34 = vpop.xlane.xlu1 %644  ;;  %v1571_v35 = vpop.permute.xlu0 %1570 }
 0x603   : > { %v650_v1 = vand.u32 15, %v634_v32  ;;  %v646_v36 = vcvt.f32.s32 %v645_v34  ;;  %v1573_v37 = vunpack.i.h.bf16 %v1571_v35  ;;  %v1572_v0 = vunpack.i.l.bf16 %v1571_v35 }
 0x605   : > { %v652_v39 = vsub.s32 15, %v650_v1  ;;  %v649_v41 = vadd.s32 %v648_v33, %v646_v36  ;;  %477 = vst.msk [vmem:[#allocation2 + $0x28] sm:$0xff] %vm471_vm2, %v1573_v37  ;;  %476 = vst.msk [vmem:[#allocation2 + $0x20] sm:$0xff] %vm471_vm2, %v1572_v0  ;;  %v958_v1 = vand.u32 15, %v1911_v6 }
 0x606   : > { %615 = vst.msk [vmem:[#allocation2 + $0x28] sm:$0xff] %vm275_vm3, %v1980_v22  ;;  %614 = vst.msk [vmem:[#allocation2 + $0x20] sm:$0xff] %vm275_vm3, %v1974_v17  ;;  %v1576_v40 = vpop.permute.xlu1 %1575 }
 0x607   : > { %vm654_vm9 = vcmp.eq.s32.totalorder %v1911_v6, %v652_v39  ;;  %v651_v42 = vand.u32 15, %v649_v41  ;;  %v1578_v44 = vunpack.i.h.bf16 %v1576_v40  ;;  %v1577_v45 = vunpack.i.l.bf16 %v1576_v40 }
 0x608   : > { %v1320_v46 = vsel %vm654_vm9, 1.0, %v1713_v62  ;;  %vm2072_vm11 = vcmp.eq.s32.totalorder %v958_v1, %v1905_v4  ;;  %vm2077_vm12 = vcmp.eq.s32.totalorder %v958_v1, %v1908_v5 }
 0x609   : > { %v653_v47 = vsub.s32 15, %v651_v42  ;;  %479 = vst.msk [vmem:[#allocation2 + $0x38] sm:$0xff] %vm471_vm2, %v1578_v44  ;;  %478 = vst.msk [vmem:[#allocation2 + $0x30] sm:$0xff] %vm471_vm2, %v1577_v45  ;;  %v961_v0 = vsel %vm2072_vm11, 0.25, %v1713_v62 }
 0x60a   : > { %661 = vst.msk [vmem:[#allocation2 + $0x30] sm:$0xff] %vm275_vm3, %v1320_v46  ;;  %vm1490_vm13 = vmpackc.low %vm2077_vm12, %vm2072_vm11 }
 0x60b   : > { %vm655_vm10 = vcmp.eq.s32.totalorder %v1911_v6, %v653_v47 }
 0x60c   : > { %v1321_v22 = vsel %vm655_vm10, 1.0, %v1713_v62 }
 0x60d   : > { %662 = vst.msk [vmem:[#allocation2 + $0x38] sm:$0xff] %vm275_vm3, %v1321_v22  ;;  %v667_v17 = vld [vmem:[#allocation2 + $0x20] sm:$0xff]  ;;  %v668_v48 = vld [vmem:[#allocation2 + $0x28] sm:$0xff] }
 0x60e   : > { %1419 = vmatprep.mubr.msk.f32.mxu1 %vm679_vm8, %v667_v17 }
 0x60f   : > { %1420 = vmatmul.mubr.msk.f32.gmra.mrb[6].mxu1 %vm679_vm8, %v668_v48 }
 0x611   : > { %v669_v49 = vld [vmem:[#allocation2 + $0x30] sm:$0xff] }
 0x612   : > { %1422 = vmatprep.mubr.msk.f32.mxu1 %vm679_vm8, %v669_v49 }
 0x614   : > { %v670_v50 = vld [vmem:[#allocation2 + $0x38] sm:$0xff] }
 0x615   : > { %1423 = vmatmul.mubr.msk.f32.gmra.mrb[8].mxu1 %vm679_vm8, %v670_v50 }
 0x65c   : > { %v1415_v52 = vpop.f32.mrb[2].mxu1 }
 0x65d   : > { %v776_v53 = vadd.f32 %v1415_v52, %v1322_v51  ;;  %v770_v54 = vpop.f32.mrb[3].mxu1  ;;  %v962_v52 = vsel %vm2077_vm12, 0.25, %v1713_v62 }
 0x65e   : > { %v771_v55 = vadd.f32 %v1322_v51, %v770_v54 }
 0x65f   : > { %v810_v60 = vmax.f32 %v776_v53, 0.0  ;;  %v1057_v53 = vadd.s32 128, %v1911_v6 }
 0x660   : > { %v809_v56 = vmax.f32 %v771_v55, 0.0  ;;  %v1418_v59 = vpop.f32.mrb[4].mxu1  ;;  %v1716_v55 = vmov 1.0|1.0  }
 0x661   : > { %v786_v61 = vadd.f32 %v1418_v59, %v1322_v51  ;;  %v780_v2 = vpop.f32.mrb[5].mxu1  ;;  %v1058_v54 = vand.u32 15, %v1057_v53  ;;  %v405_v59 = vpop.permute.xlu0 %404 }
 0x662   : > { %v781_v7 = vadd.f32 %v1322_v51, %v780_v2  ;;  %1427 = vmatprep.mubr.msk.f32.mxu0 %vm191_vm0, %v809_v56 }
 0x663   : > { %1428 = vmatmul.mubr.msk.f32.vlgmr.msra.gmra.mrb[2].mxu0 %vm191_vm0, %v810_v60  ;;  %v812_v9 = vmax.f32 %v786_v61, 0.0  ;;  %vm1059_vm14 = vcmp.eq.s32.totalorder %v1058_v54, %v1905_v4  ;;  %vm1060_vm15 = vcmp.eq.s32.totalorder %v1058_v54, %v1908_v5  ;;  %v408_v60 = vadd.f32 %v1964_v57, %v405_v59 }
 0x664   : > { %v811_v8 = vmax.f32 %v781_v7, 0.0  ;;  %vm1488_vm1 = vmpackc.low %vm1060_vm15, %vm1059_vm14  ;;  %v407_v61 = vadd.f32 %v405_v59, %v1968_v58  ;;  %v1155_v57 = vmul.u32 16, %v1908_v5  ;;  %v1154_v58 = vmul.u32 16, %v1905_v4 }
 0x665   : > { %1489 = vmatprep.subr.msk.bf16.mxu0 %vm1488_vm1, %v1716_v55 }
 0x666   : > { %1430 = vmatprep.mubr.msk.f32.mxu0 %vm191_vm0, %v811_v8  ;;  %1491 = vmatpush1.bf16.msk.msra.mxu0 %vm1490_vm13, %v1716_v55 }
 0x667   : > { %1431 = vmatmul.mubr.msk.f32.gmra.mrb[4].mxu0 %vm191_vm0, %v812_v9 }
 0x6e2   : > { %v1421_v11 = vpop.f32.mrb[6].mxu1 }
 0x6e3   : > { %v796_v12 = vadd.f32 %v1421_v11, %v1322_v51  ;;  %v790_v13 = vpop.f32.mrb[7].mxu1 }
 0x6e4   : > { %v791_v14 = vadd.f32 %v1322_v51, %v790_v13 }
 0x6e5   : > { %v814_v16 = vmax.f32 %v796_v12, 0.0 }
 0x6e6   : > { %v813_v15 = vmax.f32 %v791_v14, 0.0 }
 0x6e8   : > { %v1424_v18 = vpop.f32.mrb[8].mxu1  ;;  %1433 = vmatprep.mubr.msk.f32.mxu0 %vm191_vm0, %v813_v15  ;;  %v1152_v15 = vand.u32 4294967280, %v1911_v6 }
 0x6e9   : > { %v806_v19 = vadd.f32 %v1424_v18, %v1322_v51  ;;  %v800_v20 = vpop.f32.mrb[9].mxu1  ;;  %1434 = vmatmul.mubr.msk.f32.gmra.mrb[6].mxu0 %vm191_vm0, %v814_v16  ;;  %v1153_v16 = vand.u32 4294967280, %v1057_v53 }
 0x6ea   : > { %v801_v63 = vadd.f32 %v1322_v51, %v800_v20  ;;  %vm1158_vm2 = vcmp.eq.s32.totalorder %v1152_v15, %v1155_v57  ;;  %vm1156_vm4 = vcmp.eq.s32.totalorder %v1152_v15, %v1154_v58 }
 0x6eb   : > { %v816_v21 = vmax.f32 %v806_v19, 0.0  ;;  %vm1159_vm5 = vcmp.eq.s32.totalorder %v1153_v16, %v1155_v57  ;;  %vm1157_vm6 = vcmp.eq.s32.totalorder %v1153_v16, %v1154_v58 }
 0x6ec   : > { %v815_v10 = vmax.f32 %v801_v63, 0.0 }
 0x6ee   : > { %1436 = vmatprep.mubr.msk.f32.mxu0 %vm191_vm0, %v815_v10 }
 0x6ef   : > { %1437 = vmatmul.mubr.msk.f32.gmra.mrb[8].mxu0 %vm191_vm0, %v816_v21  ;;  %vm963_vm0 = vcmask 523264  }
 0x6f0   : > { %1139 = vmatprep.mubr.f32.mxu0 %v1713_v62  ;;  %1455 = vmatprep.mubr.msk.f32.mxu1 %vm963_vm0, %v961_v0 }
 0x736   : > { %v1429_v24 = vpop.f32.mrb[2].mxu0 }
 0x737   : > { %v917_v25 = vadd.f32 %v1429_v24, %v1331_v23  ;;  %v911_v43 = vpop.f32.mrb[3].mxu0 }
 0x738   : > { %v912_v38 = vadd.f32 %v1331_v23, %v911_v43 }
 0x739   : > { %v951_v26 = vmax.f32 %v917_v25, 0.0 }
 0x73a   : > { %v950_v27 = vmax.f32 %v912_v38, 0.0  ;;  %v1432_v28 = vpop.f32.mrb[4].mxu0 }
 0x73b   : > { %v927_v29 = vadd.f32 %v1432_v28, %v1331_v23  ;;  %v921_v30 = vpop.f32.mrb[5].mxu0 }
 0x73c   : > { %v1472_v31 = vpack.c.bf16 %v951_v26, %v950_v27  ;;  %v922_v32 = vadd.f32 %v1331_v23, %v921_v30  ;;  %v1718_v27 = vmov 1966171168  }
 0x73d   : > { %v953_v33 = vmax.f32 %v927_v29, 0.0  ;;  %v1182_v28 = vunpack.c.l.s4 %v1718_v27 }
 0x73e   : > { %v952_v34 = vmax.f32 %v922_v32, 0.0  ;;  %1473 = vmatprep.subr.bf16.mxu1 %v1472_v31 }
 0x73f   : > { %1475 = vmatpush3.bf16.msra.mxu1 %v1472_v31 }
 0x740   : > { %v1476_v35 = vpack.c.bf16 %v953_v33, %v952_v34  ;;  %v1183_v33 = vunpack.c.0.s8 %v1182_v28 }
 0x742   : > { %1477 = vmatprep.subr.bf16.mxu1 %v1476_v35  ;;  %v1186_v37 = vsub.s32 %v1183_v33, %v1905_v4 }
 0x743   : > { %1479 = vmatpush3.bf16.msra.mxu1 %v1476_v35 }
 0x7bc   : > { %v1435_v39 = vpop.f32.mrb[6].mxu0 }
 0x7bd   : > { %v937_v41 = vadd.f32 %v1435_v39, %v1331_v23  ;;  %v931_v40 = vpop.f32.mrb[7].mxu0 }
 0x7be   : > { %v932_v42 = vadd.f32 %v1331_v23, %v931_v40 }
 0x7bf   : > { %v955_v44 = vmax.f32 %v937_v41, 0.0 }
 0x7c0   : > { %v954_v45 = vmax.f32 %v932_v42, 0.0 }
 0x7c2   : > { %v1480_v46 = vpack.c.bf16 %v955_v44, %v954_v45  ;;  %v1438_v47 = vpop.f32.mrb[8].mxu0 }
 0x7c3   : > { %v947_v22 = vadd.f32 %v1438_v47, %v1331_v23  ;;  %v941_v17 = vpop.f32.mrb[9].mxu0 }
 0x7c4   : > { %v942_v48 = vadd.f32 %v1331_v23, %v941_v17  ;;  %1481 = vmatprep.subr.bf16.mxu1 %v1480_v46 }
 0x7c5   : > { %v957_v49 = vmax.f32 %v947_v22, 0.0  ;;  %1483 = vmatpush3.bf16.msra.mxu1 %v1480_v46 }
 0x7c6   : > { %v956_v50 = vmax.f32 %v942_v48, 0.0 }
 0x7c8   : > { %v1484_v51 = vpack.c.bf16 %v957_v49, %v956_v50 }
 0x7ca   : > { %1485 = vmatprep.subr.bf16.mxu1 %v1484_v51 }
 0x7cb   : > { %1487 = vmatpush3.bf16.msra.mxu1 %v1484_v51 }
 0x7cc   : > { %1492 = vmatprep.subr.msk.bf16.mxu1 %vm1488_vm1, %v1716_v55 }
 0x7ce   : > { %1456 = vmatmul.mubr.msk.f32.vlgmr.msra.gmra.mrb[10].mxu1 %vm963_vm0, %v962_v52 }
 0x7cf   : > { %1145 = vmatprep.mubr.f32.mxu1 %v1713_v62  ;;  %1493 = vmatpush1.bf16.msk.msra.mxu1 %vm1490_vm13, %v1716_v55 }
 0x8a1   : > { %v1457_v56 = vpop.f32.mrb[10].mxu1 }
 0x8a2   : > { %1049 = vrot.lane.b32.xlu0 %v1457_v56, %s1715_s17  ;;  %v1036_v62 = vpop.f32.mrb[11].mxu1 }
 0x8a3   : > { %1047 = vrot.lane.b32.xlu1 %v1036_v62, %s1715_s17 }
 0x914   : > { %v1050_v2 = vpop.permute.xlu0 %1049 }
 0x915   : > { %v1054_v7 = vadd.f32 %v1050_v2, %v408_v60  ;;  %v1048_v8 = vpop.permute.xlu1 %1047 }
 0x916   : > { %v1053_v9 = vadd.f32 %v1048_v8, %v407_v61 }
 0x917   : > { %v1056_v11 = vmax.f32 %v1054_v7, 0.0 }
 0x918   : > { %v1055_v12 = vmax.f32 %v1053_v9, 0.0 }
 0x919   : > { %1069 = vrot.lane.b32.xlu0 %v1056_v11, %s1717_s4 }
 0x91a   : > { %1067 = vrot.lane.b32.xlu1 %v1055_v12, %s1717_s4 }
 0x98b   : > { %v1070_v13 = vpop.permute.xlu0 %1069 }
 0x98c   : > { %1347 = vmatmul.mubr.msk.f32.vlgmr.msra.gmra.mrb[12].mxu1 %vm275_vm3, %v1070_v13  ;;  %v1068_v14 = vpop.permute.xlu1 %1067 }
 0x98d   : > { %1346 = vmatmul.mubr.msk.f32.vlgmr.msra.gmra.mrb[10].mxu0 %vm275_vm3, %v1068_v14  ;;  %vm1198_vm3 = vcmp.lt.s32.totalorder %v184_v3, 256 }
 0xa5f   : > { %v1147_v18 = vpop.f32.mrb[12].mxu1 }
 0xa60   : > { %v1162_v19 = vsel %vm1158_vm2, %v1147_v18, 0.0  ;;  %v1141_v20 = vpop.f32.mrb[10].mxu0  ;;  %v1149_v63 = vpop.f32.mrb[13].mxu1 }
 0xa61   : > { %v1160_v10 = vsel %vm1156_vm4, %v1141_v20, 0.0  ;;  %v1163_v21 = vsel %vm1159_vm5, %v1149_v63, 0.0  ;;  %v1143_v23 = vpop.f32.mrb[11].mxu0 }
 0xa62   : > { %v1164_v24 = vadd.f32 %v1162_v19, %v1160_v10  ;;  %v1161_v25 = vsel %vm1157_vm6, %v1143_v23, 0.0 }
 0xa63   : > { %v1171_v6 = vadd.f32 %v1163_v21, %v1161_v25 }
 0xa64   : > { %v1165_v43 = vrot.slane %v1164_v24, 4 }
 0xa65   : > { %v1172_v5 = vrot.slane %v1171_v6, 4 }
 0xa66   : > { %v1166_v38 = vadd.f32 %v1165_v43, %v1164_v24 }
 0xa67   : > { %v1173_v26 = vadd.f32 %v1172_v5, %v1171_v6 }
 0xa68   : > { %v1167_v29 = vrot.slane %v1166_v38, 2 }
 0xa69   : > { %v1174_v30 = vrot.slane %v1173_v26, 2 }
 0xa6a   : > { %v1168_v31 = vadd.f32 %v1167_v29, %v1166_v38 }
 0xa6b   : > { %v1175_v32 = vadd.f32 %v1174_v30, %v1173_v26 }
 0xa6c   : > { %v1169_v34 = vrot.slane %v1168_v31, 1 }
 0xa6d   : > { %v1176_v35 = vrot.slane %v1175_v32, 1 }
 0xa6e   : > { %v1170_v1 = vadd.f32 %v1169_v34, %v1168_v31 }
 0xa6f   : > { %v1177_v36 = vadd.f32 %v1176_v35, %v1175_v32 }
 0xa71   : > { %v1180_v0 = vcombine.low %v1170_v1, %v1177_v36 }
 0xa73   : > { %v1187_v39 = vrot.slane %v1180_v0, %v1186_v37 }
 0xa75   : > { %v1194_v41 = vrot.slane %v1187_v39, %v1186_v37 }
 0xa77   : > { %1200 = vst.msk [vmem:[%s176_s22] sm:$0x3] %vm1198_vm3, %v1194_v41 }
 0xa78   : > { %1650 = shalt.err (!%p1647_p7)
}
 0xa79   : > { %s1651_s26 = scalar_lea.hbm %s2123_s7, 32  ;;  %s1655_s30 = scalar_lea.hbm %s2169_s2, 64 }
 0xa7a   : > { %p1652_p9 = scmp.ne.s32.totalorder %s2123_s7, %s1651_s26  ;;  %p1656_p5 = scmp.lt.u32.totalorder %s2123_s7, %s2169_s2 }
 0xa7b   : > { %p1657_p2 = scmp.lt.u32.totalorder %s1655_s30, %s1651_s26  ;;  %p1659_p4 = scmp.lt.u32.totalorder %s1651_s26, %s2123_s7 }
 0xa7c   : > { %p1653_p1 = pnand %p1652_p9, %p1829_p12 }
 0xa7d   : > { %p1658_p11 = por %p1657_p2, %p1656_p5 }
 0xa7e   : > { %p1654_p0 = pneg %p1653_p1 }
 0xa7f   : > { %p1660_p6 = por %p1659_p4, %p1658_p11 }
 0xa81   : > { %p1661_p8 = pnand %p1660_p6, %p1654_p0 }
 0xa83   : > { %1664 = shalt.err (!%p1661_p8)
}
 0xa84   : > { %1500 = dma.vmem_to_hbm [thread:$0]  (%p1829_p12), %s2125_s23, 32, %s2123_s7, %s1202_s20  }
 0xa85 PF: > { %s1228_s17 = sand.u32 1, %s1695_s9   ;;  %p2188_p10 = scmp.ne.s32.totalorder %s2174_s16, 0 }
 0xa86   : > { %p2189_p13 = scmp.ge.s32.totalorder %s1707_s12, 2  ;;  %s1229_s4 = scalar_lea.sflag [#allocation6], %s1228_s17 }
 0xa88   : > { %p1511_p3 = pnand %p2189_p13, %p2188_p10 }
 0xa8a   : > { %1690 = dma.done.wait (!%p1511_p3), %s1229_s4, 32  }
 0xa8b   : > { %1692 = vsyncadd (!%p1511_p3), %s1229_s4, 4294967264  ;;  %p16_p7 = scmp.ge.s32.totalorder %s1791_s21, 4   ;;  %s2190_s9 = smov %s1699_s10 }
 0xa8c   : > { %s2191_s10 = smov %s1703_s11  ;;  %s2192_s11 = smov %s1825_s8 }
 0xa8d   : > { %s2193_s12 = smov %s1791_s21  ;;  %18 = sbr.rel (!%p16_p7) target bundleno = 6 (0x6), region = 80 }
 0xa94   :  { %1234 = vsyncpa [#allocation5], 1 }
 0xa95   :  { %1236 = vsyncpa [#allocation5 + $0x1], 1 }
 0xa96   :  { %1237 = vsyncpa [#allocation8], 1 }
 0xa97   :  { %1238 = vsyncpa [#allocation6], 1 }
 0xa98   :  { %1240 = vsyncpa [#allocation6 + $0x1], 1 }

</bundles_post_ra>
